<compile_context>
chip_gen: v5e
topology: v5e:2x2
jax: 0.10.0
libtpu: 0.0.40
codegen_flags: <defaults>
</compile_context>

<pallas_src>
import functools

import jax
import jax.numpy as jnp
from jax.experimental import pallas as pl
from jax.experimental.pallas import tpu as pltpu


# ---------------------------------------------------------------------------
# Fused kernel: attention + prenet + LSTM step + mel/stop heads
# ---------------------------------------------------------------------------
def _decoder_kernel(q_ref, enc_ref, prev_mel_ref, h_ref, c_ref,
                    wk_ref, we_ref,
                    wp1_ref, bp1_ref, wp2_ref, bp2_ref,
                    wx_ref, wc_ref, wh_ref, bg_ref,
                    wout_h_ref, wout_c_ref, bout_ref,
                    melstop_ref, hn_ref, cn_ref, attn_ref,
                    *, t_chunk):
    """One batch tile of the fully fused Tacotron2 decoder step.

    q_ref       : (TB, H)   pre-projected query (hidden @ Wq, hoisted), f32
    enc_ref     : (TB, T, H) encoder outputs (compute dtype, e.g. bf16)
    prev_mel_ref: (TB, n_mels) f32
    h_ref/c_ref : (TB, H)   LSTM state, f32
    weights     : pre-transposed (in, out); LSTM gate weights fused to (H, 4H)
                  in PyTorch gate order (i, f, g, o); mel+stop head fused to
                  (H, n_mels+1).
    outputs     : melstop (TB, n_mels+1) raw logits for the stop column,
                  h'/c' (TB, H), attn (TB, T) lane-dense.
    """
    f32 = jnp.float32
    tb, t, h = enc_ref.shape

    def mm(a, w_ref):
        # MXU matmul in the weight dtype (bf16 fast path), f32 accumulation.
        return jnp.dot(a.astype(w_ref.dtype), w_ref[...],
                       preferred_element_type=f32)

    q = q_ref[...]                                   # (TB, H) f32
    we = we_ref[...]                                 # (1, H)  f32

    tc = max(1, min(t, t_chunk))
    n_chunks = (t + tc - 1) // tc

    # --- Attention pass 1: energies, T-chunked (bounds live f32 temporaries) ---
    energies = []
    for c in range(n_chunks):
        lo = c * tc
        sz = min(tc, t - lo)
        enc_c = enc_ref[:, lo:lo + sz, :]                              # (TB, sz, H)
        keys_c = jnp.dot(enc_c.reshape(tb * sz, h), wk_ref[...],
                         preferred_element_type=f32).reshape(tb, sz, h)
        energies.append(jnp.sum(jnp.tanh(q[:, None, :] + keys_c) * we, axis=-1))
    energy = energies[0] if n_chunks == 1 else jnp.concatenate(energies, axis=-1)

    # Softmax over T on the lane axis (matches PyTorch softmax(dim=1)), f32.
    m = jnp.max(energy, axis=-1, keepdims=True)
    p = jnp.exp(energy - m)
    attn = p / jnp.sum(p, axis=-1, keepdims=True)                      # (TB, T)
    attn_ref[...] = attn.astype(attn_ref.dtype)

    # --- Attention pass 2: ctx accumulation folded into the T-chunk loop ---
    ctx = jnp.zeros((tb, h), f32)
    for c in range(n_chunks):
        lo = c * tc
        sz = min(tc, t - lo)
        enc_c = enc_ref[:, lo:lo + sz, :].astype(f32)
        attn_c = attn[:, lo:lo + sz]
        ctx = ctx + jnp.einsum("bqt,bth->bqh", attn_c[:, None, :], enc_c,
                               preferred_element_type=f32)[:, 0, :]    # (TB, H)

    # --- Prenet: Linear -> ReLU -> Linear -> ReLU ---
    # TODO(synk): nn.Dropout(0.1) is implemented as identity (eval mode only).
    pre1 = jnp.maximum(mm(prev_mel_ref[...], wp1_ref) + bp1_ref[...], 0.0)
    pre2 = jnp.maximum(mm(pre1, wp2_ref) + bp2_ref[...], 0.0)

    # --- Single LSTM step, gates fused into (TB, 4H) lane-dense matmuls ---
    h_prev = h_ref[...]
    c_prev = c_ref[...]
    gates = (mm(pre2, wx_ref) + mm(ctx, wc_ref)
             + mm(h_prev, wh_ref) + bg_ref[...])                       # (TB, 4H)
    i_g = jax.nn.sigmoid(gates[:, 0 * h:1 * h])
    f_g = jax.nn.sigmoid(gates[:, 1 * h:2 * h])
    g_g = jnp.tanh(gates[:, 2 * h:3 * h])
    o_g = jax.nn.sigmoid(gates[:, 3 * h:4 * h])
    c_new = f_g * c_prev + i_g * g_g
    h_new = o_g * jnp.tanh(c_new)

    # --- Fused mel + stop head: one lane-dense (TB, n_mels+1) output ---
    out = mm(h_new, wout_h_ref) + mm(ctx, wout_c_ref) + bout_ref[...]
    melstop_ref[...] = out.astype(melstop_ref.dtype)
    hn_ref[...] = h_new.astype(hn_ref.dtype)
    cn_ref[...] = c_new.astype(cn_ref.dtype)


# ---------------------------------------------------------------------------
# Wrapper
# ---------------------------------------------------------------------------
def _pad_batch(x, b_pad):
    b = x.shape[0]
    if b == b_pad:
        return x
    return jnp.pad(x, ((0, b_pad - b),) + ((0, 0),) * (x.ndim - 1))


def _batch_spec(tb, trailing):
    zeros = (0,) * len(trailing)
    return pl.BlockSpec((tb,) + tuple(trailing), lambda b, _z=zeros: (b,) + _z)


def _const_spec(shape):
    zeros = (0,) * len(shape)
    return pl.BlockSpec(tuple(shape), lambda b, _z=zeros: _z)


def decoder_forward(memory, prev_mel, hidden, params, *,
                    batch_tile=None, t_chunk=512):
    """One Tacotron2 decoder step.

    memory   : (B, T, H) f32 encoder outputs (cast to the param dtype inside)
    prev_mel : (B, n_mels) f32
    hidden   : (h, c), each (1, B, H)  (single-layer LSTM state)
    params   : dict from make_kernel_params()
    Returns (mel (B, n_mels), stop (B, 1), (h', c'), attn (B, T, 1)).
    """
    h0, c0 = hidden
    B, T, H = memory.shape
    n_mels = prev_mel.shape[-1]
    dh = h0[-1]                                   # (B, H)
    c_prev = c0[-1]                               # (B, H)
    cdt = params["wk"].dtype                      # compute dtype (bf16 or f32)

    mem = memory.astype(cdt)
    # Hoisted query projection: one (B, H) x (H, H) matmul, Wq never enters VMEM.
    query = jnp.dot(dh.astype(cdt), params["wq"],
                    preferred_element_type=jnp.float32)                # (B, H) f32

    # Batch tile: multiple of 8 sublanes; heuristic keeps the parallel grid axis
    # >= 2 steps once B > 8 (v7x dual TensorCore), while staying <= 32.
    if batch_tile is None:
        tb = min(32, max(8, 8 * ((B + 15) // 16)))
    else:
        tb = max(8, ((batch_tile + 7) // 8) * 8)
    b_pad = ((B + tb - 1) // tb) * tb
    grid = (b_pad // tb,)

    # Explicit scoped-VMEM budget: double-buffered batch blocks + weights +
    # per-chunk f32 temporaries (keys / tanh / fused-gate tile), clamped to
    # [16 MiB, 48 MiB] so it compiles on v5e (16 MiB default) and v7x (64 MiB).
    wbytes = sum(int(v.size) * jnp.dtype(v.dtype).itemsize
                 for k, v in params.items() if k != "wq")
    blk = (tb * T * H * jnp.dtype(cdt).itemsize
           + tb * (3 * H + n_mels) * 4
           + tb * (2 * H + T + n_mels + 1) * 4)
    tmp = 3 * tb * min(T, t_chunk) * H * 4 + tb * 4 * H * 4
    vmem_limit = int(min(max(2 * (blk + wbytes) + tmp + (2 << 20), 16 << 20),
                         48 << 20))

    kernel = functools.partial(_decoder_kernel, t_chunk=t_chunk)

    melstop_p, hn_p, cn_p, attn_p = pl.pallas_call(
        kernel,
        out_shape=(jax.ShapeDtypeStruct((b_pad, n_mels + 1), jnp.float32),
                   jax.ShapeDtypeStruct((b_pad, H), jnp.float32),
                   jax.ShapeDtypeStruct((b_pad, H), jnp.float32),
                   jax.ShapeDtypeStruct((b_pad, T), jnp.float32)),
        grid_spec=pl.GridSpec(
            grid=grid,
            in_specs=[
                _batch_spec(tb, (H,)),          # query (hoisted projection)
                _batch_spec(tb, (T, H)),        # encoder outputs
                _batch_spec(tb, (n_mels,)),     # prev_mel
                _batch_spec(tb, (H,)),          # h_{t-1}
                _batch_spec(tb, (H,)),          # c_{t-1}
                _const_spec((H, H)),            # Wk
                _const_spec((1, H)),            # We (row vector)
                _const_spec((n_mels, H)),       # prenet W1
                _const_spec((1, H)),            # prenet b1
                _const_spec((H, H)),            # prenet W2
                _const_spec((1, H)),            # prenet b2
                _const_spec((H, 4 * H)),        # LSTM W_ih (prenet chunk, fused gates)
                _const_spec((H, 4 * H)),        # LSTM W_ih (context chunk, fused gates)
                _const_spec((H, 4 * H)),        # LSTM W_hh (fused gates)
                _const_spec((1, 4 * H)),        # LSTM bias (b_ih + b_hh)
                _const_spec((H, n_mels + 1)),   # mel+stop head (lstm-out chunk)
                _const_spec((H, n_mels + 1)),   # mel+stop head (context chunk)
                _const_spec((1, n_mels + 1)),   # mel+stop bias
            ],
            out_specs=[
                _batch_spec(tb, (n_mels + 1,)),  # fused mel | stop logits
                _batch_spec(tb, (H,)),           # h'
                _batch_spec(tb, (H,)),           # c'
                _batch_spec(tb, (T,)),           # attention weights, lane-dense
            ],
        ),
        compiler_params=pltpu.CompilerParams(
            dimension_semantics=("parallel",),
            vmem_limit_bytes=vmem_limit),
    )(_pad_batch(query, b_pad), _pad_batch(mem, b_pad),
      _pad_batch(prev_mel, b_pad), _pad_batch(dh, b_pad),
      _pad_batch(c_prev, b_pad),
      params["wk"], params["we_row"],
      params["wp1"], params["bp1"], params["wp2"], params["bp2"],
      params["lstm_wx"], params["lstm_wc"], params["lstm_wh"], params["lstm_b"],
      params["wout_h"], params["wout_c"], params["bout"])

    mel = melstop_p[:B, :n_mels]
    stop = jax.nn.sigmoid(melstop_p[:B, n_mels:])     # stop sigmoid in wrapper
    h_new = hn_p[:B][None, :, :]
    c_new = cn_p[:B][None, :, :]
    attn = attn_p[:B, :, None]                        # back to PyTorch's (B, T, 1)
    return mel, stop, (h_new, c_new), attn


def make_kernel_params(pt, dtype=jnp.bfloat16):
    """Convert PyTorch-layout weights (out, in) to the kernel layout (in, out).

    Matmul weights are cast to `dtype` (bf16 recommended); biases and the
    energy row-vector (VPU reduce) stay f32.  LSTM gate weights are fused to
    (H, 4H) per input chunk (prenet-out / context / hidden); the mel and stop
    heads are fused to a single (H, n_mels+1) head per input chunk.
    """
    H = pt["wk"].shape[0]
    n_mels = pt["w_mel"].shape[0]
    wd = lambda x: jnp.asarray(x).astype(dtype)
    f32 = lambda x: jnp.asarray(x).astype(jnp.float32)
    w_ih = pt["w_ih"]                                  # (4H, 2H), gates (i,f,g,o)
    wout_h = jnp.concatenate([pt["w_mel"][:, :H], pt["w_stop"][:, :H]], axis=0).T
    wout_c = jnp.concatenate([pt["w_mel"][:, H:], pt["w_stop"][:, H:]], axis=0).T
    bout = jnp.concatenate([pt["b_mel"], pt["b_stop"]]).reshape(1, n_mels + 1)
    return dict(
        wq=wd(pt["wq"].T),
        wk=wd(pt["wk"].T),
        we_row=f32(pt["we"]),                          # (1, H)
        wp1=wd(pt["prenet_w1"].T),
        bp1=f32(pt["prenet_b1"].reshape(1, -1)),
        wp2=wd(pt["prenet_w2"].T),
        bp2=f32(pt["prenet_b2"].reshape(1, -1)),
        lstm_wx=wd(w_ih[:, :H].T),                     # (H, 4H)
        lstm_wc=wd(w_ih[:, H:].T),                     # (H, 4H)
        lstm_wh=wd(pt["w_hh"].T),                      # (H, 4H)
        lstm_b=f32((pt["b_ih"] + pt["b_hh"]).reshape(1, 4 * H)),
        wout_h=wd(wout_h),                             # (H, n_mels+1)
        wout_c=wd(wout_c),                             # (H, n_mels+1)
        bout=f32(bout),                                # (1, n_mels+1)
    )


def _reference(memory, prev_mel, hidden, pt):
    """Pure-JAX f32 mirror of the PyTorch Decoder.forward (eval mode)."""
    h0, c0 = hidden
    dh = h0[-1]
    c_prev = c0[-1]
    # Attention
    query = dh @ pt["wq"].T                                     # (B, H)
    keys = memory @ pt["wk"].T                                  # (B, T, H)
    energy = jnp.tanh(query[:, None, :] + keys) @ pt["we"].T    # (B, T, 1)
    attn = jax.nn.softmax(energy, axis=1)
    ctx = jnp.einsum("btk,bth->bkh", attn, memory)[:, 0, :]     # (B, H)
    # Prenet (dropout = identity in eval mode)
    pre1 = jax.nn.relu(prev_mel @ pt["prenet_w1"].T + pt["prenet_b1"])
    pre2 = jax.nn.relu(pre1 @ pt["prenet_w2"].T + pt["prenet_b2"])
    # Single-step LSTM
    x = jnp.concatenate([pre2, ctx], axis=-1)
    gates = x @ pt["w_ih"].T + pt["b_ih"] + dh @ pt["w_hh"].T + pt["b_hh"]
    i, f, g, o = jnp.split(gates, 4, axis=-1)
    i = jax.nn.sigmoid(i)
    f = jax.nn.sigmoid(f)
    g = jnp.tanh(g)
    o = jax.nn.sigmoid(o)
    c_new = f * c_prev + i * g
    h_new = o * jnp.tanh(c_new)
    # Output heads
    concat_out = jnp.concatenate([h_new, ctx], axis=-1)
    mel = concat_out @ pt["w_mel"].T + pt["b_mel"]
    stop = jax.nn.sigmoid(concat_out @ pt["w_stop"].T + pt["b_stop"])
    return mel, stop, (h_new[None], c_new[None]), attn


def _check(got, want, atol, rtol):
    got_flat = (got[0], got[1], got[2][0], got[2][1], got[3])
    want_flat = (want[0], want[1], want[2][0], want[2][1], want[3])
    for g, w in zip(got_flat, want_flat):
        assert g.shape == w.shape, (g.shape, w.shape)
        g32 = g.astype(jnp.float32)
        err = float(jnp.max(jnp.abs(g32 - w)))
        assert jnp.allclose(g32, w, atol=atol, rtol=rtol), err


if __name__ == "__main__":
    B, T, H, N_MELS = 2, 16, 32, 16

    key = jax.random.PRNGKey(0)
    ks = iter(jax.random.split(key, 19))

    memory = jax.random.normal(next(ks), (B, T, H), jnp.float32)
    prev_mel = jax.random.normal(next(ks), (B, N_MELS), jnp.float32)
    h0 = jax.random.normal(next(ks), (1, B, H), jnp.float32)
    c0 = jax.random.normal(next(ks), (1, B, H), jnp.float32)

    def uni(k, shape, fan_in):
        s = 1.0 / float(fan_in) ** 0.5
        return jax.random.uniform(k, shape, jnp.float32, -s, s)

    # PyTorch-layout parameters (weight shape = (out, in)).
    pt = dict(
        wq=uni(next(ks), (H, H), H),
        wk=uni(next(ks), (H, H), H),
        we=uni(next(ks), (1, H), H),
        prenet_w1=uni(next(ks), (H, N_MELS), N_MELS),
        prenet_b1=uni(next(ks), (H,), N_MELS),
        prenet_w2=uni(next(ks), (H, H), H),
        prenet_b2=uni(next(ks), (H,), H),
        w_ih=uni(next(ks), (4 * H, 2 * H), H),
        w_hh=uni(next(ks), (4 * H, H), H),
        b_ih=uni(next(ks), (4 * H,), H),
        b_hh=uni(next(ks), (4 * H,), H),
        w_mel=uni(next(ks), (N_MELS, 2 * H), 2 * H),
        b_mel=uni(next(ks), (N_MELS,), 2 * H),
        w_stop=uni(next(ks), (1, 2 * H), 2 * H),
        b_stop=uni(next(ks), (1,), 2 * H),
    )

    ref = _reference(memory, prev_mel, (h0, c0), pt)

    # 1) Exact-semantics check: f32 weights, single T chunk (tight tolerance).
    params_f32 = make_kernel_params(pt, dtype=jnp.float32)
    out_f32 = decoder_forward(memory, prev_mel, (h0, c0), params_f32)
    jax.block_until_ready(out_f32)
    _check(out_f32, ref, atol=5e-4, rtol=5e-4)

    # 2) Performance config: bf16 weights/memory + T-chunked attention (2 chunks),
    #    checked against the f32 reference with a bf16-appropriate tolerance.
    params_bf16 = make_kernel_params(pt, dtype=jnp.bfloat16)
    out_bf16 = decoder_forward(memory, prev_mel, (h0, c0), params_bf16, t_chunk=8)
    jax.block_until_ready(out_bf16)
    _check(out_bf16, ref, atol=1e-1, rtol=1e-1)

    print("KERNEL_OK")
</pallas_src>

<mosaic_0001>
module attributes {stable_mosaic.version = 11 : i64} {
  func.func @_decoder_kernel(%arg0: i32, %arg1: memref<8x32xf32, #tpu.memory_space<vmem>>, %arg2: memref<8x16x32xf32, #tpu.memory_space<vmem>>, %arg3: memref<8x16xf32, #tpu.memory_space<vmem>>, %arg4: memref<8x32xf32, #tpu.memory_space<vmem>>, %arg5: memref<8x32xf32, #tpu.memory_space<vmem>>, %arg6: memref<32x32xf32, #tpu.memory_space<vmem>>, %arg7: memref<1x32xf32, #tpu.memory_space<vmem>>, %arg8: memref<16x32xf32, #tpu.memory_space<vmem>>, %arg9: memref<1x32xf32, #tpu.memory_space<vmem>>, %arg10: memref<32x32xf32, #tpu.memory_space<vmem>>, %arg11: memref<1x32xf32, #tpu.memory_space<vmem>>, %arg12: memref<32x128xf32, #tpu.memory_space<vmem>>, %arg13: memref<32x128xf32, #tpu.memory_space<vmem>>, %arg14: memref<32x128xf32, #tpu.memory_space<vmem>>, %arg15: memref<1x128xf32, #tpu.memory_space<vmem>>, %arg16: memref<32x17xf32, #tpu.memory_space<vmem>>, %arg17: memref<32x17xf32, #tpu.memory_space<vmem>>, %arg18: memref<1x17xf32, #tpu.memory_space<vmem>>, %arg19: memref<8x17xf32, #tpu.memory_space<vmem>>, %arg20: memref<8x32xf32, #tpu.memory_space<vmem>>, %arg21: memref<8x32xf32, #tpu.memory_space<vmem>>, %arg22: memref<8x16xf32, #tpu.memory_space<vmem>>) attributes {dimension_semantics = [#tpu.dimension_semantics<parallel>], iteration_bounds = array<i64: 1>, scalar_prefetch = 0 : i64, scratch_operands = 0 : i64, tpu.core_type = #tpu.core_type<tc>, window_params = [{transform_indices = @transform_0, window_bounds = array<i64: 8, 32>}, {transform_indices = @transform_1, window_bounds = array<i64: 8, 16, 32>}, {transform_indices = @transform_2, window_bounds = array<i64: 8, 16>}, {transform_indices = @transform_3, window_bounds = array<i64: 8, 32>}, {transform_indices = @transform_4, window_bounds = array<i64: 8, 32>}, {pipeline_mode = #tpu.pipeline_mode<synchronous>, transform_indices = @transform_5, window_bounds = array<i64: 32, 32>}, {pipeline_mode = #tpu.pipeline_mode<synchronous>, transform_indices = @transform_6, window_bounds = array<i64: 1, 32>}, {pipeline_mode = #tpu.pipeline_mode<synchronous>, transform_indices = @transform_7, window_bounds = array<i64: 16, 32>}, {pipeline_mode = #tpu.pipeline_mode<synchronous>, transform_indices = @transform_8, window_bounds = array<i64: 1, 32>}, {pipeline_mode = #tpu.pipeline_mode<synchronous>, transform_indices = @transform_9, window_bounds = array<i64: 32, 32>}, {pipeline_mode = #tpu.pipeline_mode<synchronous>, transform_indices = @transform_10, window_bounds = array<i64: 1, 32>}, {pipeline_mode = #tpu.pipeline_mode<synchronous>, transform_indices = @transform_11, window_bounds = array<i64: 32, 128>}, {pipeline_mode = #tpu.pipeline_mode<synchronous>, transform_indices = @transform_12, window_bounds = array<i64: 32, 128>}, {pipeline_mode = #tpu.pipeline_mode<synchronous>, transform_indices = @transform_13, window_bounds = array<i64: 32, 128>}, {pipeline_mode = #tpu.pipeline_mode<synchronous>, transform_indices = @transform_14, window_bounds = array<i64: 1, 128>}, {pipeline_mode = #tpu.pipeline_mode<synchronous>, transform_indices = @transform_15, window_bounds = array<i64: 32, 17>}, {pipeline_mode = #tpu.pipeline_mode<synchronous>, transform_indices = @transform_16, window_bounds = array<i64: 32, 17>}, {pipeline_mode = #tpu.pipeline_mode<synchronous>, transform_indices = @transform_17, window_bounds = array<i64: 1, 17>}, {transform_indices = @transform_18, window_bounds = array<i64: 8, 17>}, {transform_indices = @transform_19, window_bounds = array<i64: 8, 32>}, {transform_indices = @transform_20, window_bounds = array<i64: 8, 32>}, {transform_indices = @transform_21, window_bounds = array<i64: 8, 16>}]} {
    %c0 = arith.constant 0 : index
    %c0_0 = arith.constant 0 : index
    %0 = vector.load %arg1[%c0, %c0_0] : memref<8x32xf32, #tpu.memory_space<vmem>>, vector<8x32xf32>
    %c0_1 = arith.constant 0 : index
    %c0_2 = arith.constant 0 : index
    %1 = vector.load %arg7[%c0_1, %c0_2] : memref<1x32xf32, #tpu.memory_space<vmem>>, vector<1x32xf32>
    %c0_3 = arith.constant 0 : index
    %c0_4 = arith.constant 0 : index
    %c0_5 = arith.constant 0 : index
    %2 = vector.load %arg2[%c0_3, %c0_4, %c0_5] : memref<8x16x32xf32, #tpu.memory_space<vmem>>, vector<8x16x32xf32>
    %3 = vector.shape_cast %2 : vector<8x16x32xf32> to vector<128x32xf32>
    %c0_6 = arith.constant 0 : index
    %c0_7 = arith.constant 0 : index
    %4 = vector.load %arg6[%c0_6, %c0_7] : memref<32x32xf32, #tpu.memory_space<vmem>>, vector<32x32xf32>
    %cst = arith.constant dense<0.000000e+00> : vector<128x32xf32>
    %5 = tpu.matmul %3, %4, %cst {dimension_numbers = #tpu.dot_dimension_numbers<[1], [0], [0], [1], [0, 0, 1, 1], [], []>} : vector<128x32xf32>, vector<32x32xf32>, vector<128x32xf32> -> vector<128x32xf32>
    %6 = vector.shape_cast %5 : vector<128x32xf32> to vector<8x16x32xf32>
    %7 = vector.shape_cast %0 : vector<8x32xf32> to vector<8x1x32xf32>
    %8 = vector.broadcast %7 : vector<8x1x32xf32> to vector<8x16x32xf32>
    %9 = arith.addf %8, %6 : vector<8x16x32xf32>
    %10 = math.tanh %9 : vector<8x16x32xf32>
    %11 = vector.shape_cast %1 : vector<1x32xf32> to vector<1x1x32xf32>
    %12 = vector.broadcast %11 : vector<1x1x32xf32> to vector<8x16x32xf32>
    %13 = arith.mulf %10, %12 : vector<8x16x32xf32>
    %cst_8 = arith.constant dense<0.000000e+00> : vector<8x16xf32>
    %14 = vector.multi_reduction <add>, %13, %cst_8 [2] : vector<8x16x32xf32> to vector<8x16xf32>
    %cst_9 = arith.constant dense<0xFF800000> : vector<8xf32>
    %15 = vector.multi_reduction <maximumf>, %14, %cst_9 [1] : vector<8x16xf32> to vector<8xf32>
    %16 = vector.shape_cast %15 : vector<8xf32> to vector<8x1xf32>
    %17 = vector.broadcast %16 : vector<8x1xf32> to vector<8x16xf32>
    %18 = arith.subf %14, %17 : vector<8x16xf32>
    %19 = math.exp %18 : vector<8x16xf32>
    %cst_10 = arith.constant dense<0.000000e+00> : vector<8xf32>
    %20 = vector.multi_reduction <add>, %19, %cst_10 [1] : vector<8x16xf32> to vector<8xf32>
    %21 = vector.shape_cast %20 : vector<8xf32> to vector<8x1xf32>
    %22 = vector.broadcast %21 : vector<8x1xf32> to vector<8x16xf32>
    %23 = arith.divf %19, %22 : vector<8x16xf32>
    %c0_11 = arith.constant 0 : index
    %c0_12 = arith.constant 0 : index
    %24 = vector.load %arg22[%c0_11, %c0_12] : memref<8x16xf32, #tpu.memory_space<vmem>>, vector<8x16xf32>
    tpu.vector_store %arg22[%c0_11, %c0_12], %23 {strides = array<i32>} : memref<8x16xf32, #tpu.memory_space<vmem>>, vector<8x16xf32>,
    %cst_13 = arith.constant 0.000000e+00 : f32
    %25 = vector.broadcast %cst_13 : f32 to vector<8x32xf32>
    %c0_14 = arith.constant 0 : index
    %c0_15 = arith.constant 0 : index
    %c0_16 = arith.constant 0 : index
    %26 = vector.load %arg2[%c0_14, %c0_15, %c0_16] : memref<8x16x32xf32, #tpu.memory_space<vmem>>, vector<8x16x32xf32>
    %27 = vector.shape_cast %23 : vector<8x16xf32> to vector<8x1x16xf32>
    "tpu.trace_start"() <{level = 10 : i32, message = "bqt,bth->bqh"}> : () -> ()
    %cst_17 = arith.constant dense<0.000000e+00> : vector<8x1x32xf32>
    %28 = tpu.matmul %27, %26, %cst_17 {dimension_numbers = #tpu.dot_dimension_numbers<[2], [1], [1], [2], [0, 0, 0, 1, 1, 2], [0], [0]>} : vector<8x1x16xf32>, vector<8x16x32xf32>, vector<8x1x32xf32> -> vector<8x1x32xf32>
    "tpu.trace_stop"() : () -> ()
    %29 = vector.shape_cast %28 : vector<8x1x32xf32> to vector<8x32xf32>
    %30 = arith.addf %25, %29 : vector<8x32xf32>
    %c0_18 = arith.constant 0 : index
    %c0_19 = arith.constant 0 : index
    %31 = vector.load %arg3[%c0_18, %c0_19] : memref<8x16xf32, #tpu.memory_space<vmem>>, vector<8x16xf32>
    %c0_20 = arith.constant 0 : index
    %c0_21 = arith.constant 0 : index
    %32 = vector.load %arg8[%c0_20, %c0_21] : memref<16x32xf32, #tpu.memory_space<vmem>>, vector<16x32xf32>
    %cst_22 = arith.constant dense<0.000000e+00> : vector<8x32xf32>
    %33 = tpu.matmul %31, %32, %cst_22 {dimension_numbers = #tpu.dot_dimension_numbers<[1], [0], [0], [1], [0, 0, 1, 1], [], []>} : vector<8x16xf32>, vector<16x32xf32>, vector<8x32xf32> -> vector<8x32xf32>
    %c0_23 = arith.constant 0 : index
    %c0_24 = arith.constant 0 : index
    %34 = vector.load %arg9[%c0_23, %c0_24] : memref<1x32xf32, #tpu.memory_space<vmem>>, vector<1x32xf32>
    %35 = vector.broadcast %34 : vector<1x32xf32> to vector<8x32xf32>
    %36 = arith.addf %33, %35 : vector<8x32xf32>
    %cst_25 = arith.constant 0.000000e+00 : f32
    %37 = vector.broadcast %cst_25 : f32 to vector<8x32xf32>
    %38 = arith.maximumf %36, %37 : vector<8x32xf32>
    %c0_26 = arith.constant 0 : index
    %c0_27 = arith.constant 0 : index
    %39 = vector.load %arg10[%c0_26, %c0_27] : memref<32x32xf32, #tpu.memory_space<vmem>>, vector<32x32xf32>
    %cst_28 = arith.constant dense<0.000000e+00> : vector<8x32xf32>
    %40 = tpu.matmul %38, %39, %cst_28 {dimension_numbers = #tpu.dot_dimension_numbers<[1], [0], [0], [1], [0, 0, 1, 1], [], []>} : vector<8x32xf32>, vector<32x32xf32>, vector<8x32xf32> -> vector<8x32xf32>
    %c0_29 = arith.constant 0 : index
    %c0_30 = arith.constant 0 : index
    %41 = vector.load %arg11[%c0_29, %c0_30] : memref<1x32xf32, #tpu.memory_space<vmem>>, vector<1x32xf32>
    %42 = vector.broadcast %41 : vector<1x32xf32> to vector<8x32xf32>
    %43 = arith.addf %40, %42 : vector<8x32xf32>
    %cst_31 = arith.constant 0.000000e+00 : f32
    %44 = vector.broadcast %cst_31 : f32 to vector<8x32xf32>
    %45 = arith.maximumf %43, %44 : vector<8x32xf32>
    %c0_32 = arith.constant 0 : index
    %c0_33 = arith.constant 0 : index
    %46 = vector.load %arg4[%c0_32, %c0_33] : memref<8x32xf32, #tpu.memory_space<vmem>>, vector<8x32xf32>
    %c0_34 = arith.constant 0 : index
    %c0_35 = arith.constant 0 : index
    %47 = vector.load %arg5[%c0_34, %c0_35] : memref<8x32xf32, #tpu.memory_space<vmem>>, vector<8x32xf32>
    %c0_36 = arith.constant 0 : index
    %c0_37 = arith.constant 0 : index
    %48 = vector.load %arg12[%c0_36, %c0_37] : memref<32x128xf32, #tpu.memory_space<vmem>>, vector<32x128xf32>
    %cst_38 = arith.constant dense<0.000000e+00> : vector<8x128xf32>
    %49 = tpu.matmul %45, %48, %cst_38 {dimension_numbers = #tpu.dot_dimension_numbers<[1], [0], [0], [1], [0, 0, 1, 1], [], []>} : vector<8x32xf32>, vector<32x128xf32>, vector<8x128xf32> -> vector<8x128xf32>
    %c0_39 = arith.constant 0 : index
    %c0_40 = arith.constant 0 : index
    %50 = vector.load %arg13[%c0_39, %c0_40] : memref<32x128xf32, #tpu.memory_space<vmem>>, vector<32x128xf32>
    %cst_41 = arith.constant dense<0.000000e+00> : vector<8x128xf32>
    %51 = tpu.matmul %30, %50, %cst_41 {dimension_numbers = #tpu.dot_dimension_numbers<[1], [0], [0], [1], [0, 0, 1, 1], [], []>} : vector<8x32xf32>, vector<32x128xf32>, vector<8x128xf32> -> vector<8x128xf32>
    %52 = arith.addf %49, %51 : vector<8x128xf32>
    %c0_42 = arith.constant 0 : index
    %c0_43 = arith.constant 0 : index
    %53 = vector.load %arg14[%c0_42, %c0_43] : memref<32x128xf32, #tpu.memory_space<vmem>>, vector<32x128xf32>
    %cst_44 = arith.constant dense<0.000000e+00> : vector<8x128xf32>
    %54 = tpu.matmul %46, %53, %cst_44 {dimension_numbers = #tpu.dot_dimension_numbers<[1], [0], [0], [1], [0, 0, 1, 1], [], []>} : vector<8x32xf32>, vector<32x128xf32>, vector<8x128xf32> -> vector<8x128xf32>
    %55 = arith.addf %52, %54 : vector<8x128xf32>
    %c0_45 = arith.constant 0 : index
    %c0_46 = arith.constant 0 : index
    %56 = vector.load %arg15[%c0_45, %c0_46] : memref<1x128xf32, #tpu.memory_space<vmem>>, vector<1x128xf32>
    %57 = vector.broadcast %56 : vector<1x128xf32> to vector<8x128xf32>
    %58 = arith.addf %55, %57 : vector<8x128xf32>
    %59 = vector.extract_strided_slice %58 {offsets = [0, 0], sizes = [8, 32], strides = [1, 1]} : vector<8x128xf32> to vector<8x32xf32>
    %60 = arith.negf %59 : vector<8x32xf32>
    %61 = math.exp %60 : vector<8x32xf32>
    %cst_47 = arith.constant 1.000000e+00 : f32
    %62 = vector.broadcast %cst_47 : f32 to vector<8x32xf32>
    %63 = arith.addf %62, %61 : vector<8x32xf32>
    %64 = arith.divf %62, %63 : vector<8x32xf32>
    %65 = vector.extract_strided_slice %58 {offsets = [0, 32], sizes = [8, 32], strides = [1, 1]} : vector<8x128xf32> to vector<8x32xf32>
    %66 = arith.negf %65 : vector<8x32xf32>
    %67 = math.exp %66 : vector<8x32xf32>
    %cst_48 = arith.constant 1.000000e+00 : f32
    %68 = vector.broadcast %cst_48 : f32 to vector<8x32xf32>
    %69 = arith.addf %68, %67 : vector<8x32xf32>
    %70 = arith.divf %68, %69 : vector<8x32xf32>
    %71 = vector.extract_strided_slice %58 {offsets = [0, 64], sizes = [8, 32], strides = [1, 1]} : vector<8x128xf32> to vector<8x32xf32>
    %72 = math.tanh %71 : vector<8x32xf32>
    %73 = vector.extract_strided_slice %58 {offsets = [0, 96], sizes = [8, 32], strides = [1, 1]} : vector<8x128xf32> to vector<8x32xf32>
    %74 = arith.negf %73 : vector<8x32xf32>
    %75 = math.exp %74 : vector<8x32xf32>
    %cst_49 = arith.constant 1.000000e+00 : f32
    %76 = vector.broadcast %cst_49 : f32 to vector<8x32xf32>
    %77 = arith.addf %76, %75 : vector<8x32xf32>
    %78 = arith.divf %76, %77 : vector<8x32xf32>
    %79 = arith.mulf %70, %47 : vector<8x32xf32>
    %80 = arith.mulf %64, %72 : vector<8x32xf32>
    %81 = arith.addf %79, %80 : vector<8x32xf32>
    %82 = math.tanh %81 : vector<8x32xf32>
    %83 = arith.mulf %78, %82 : vector<8x32xf32>
    %c0_50 = arith.constant 0 : index
    %c0_51 = arith.constant 0 : index
    %84 = vector.load %arg16[%c0_50, %c0_51] : memref<32x17xf32, #tpu.memory_space<vmem>>, vector<32x17xf32>
    %cst_52 = arith.constant dense<0.000000e+00> : vector<8x17xf32>
    %85 = tpu.matmul %83, %84, %cst_52 {dimension_numbers = #tpu.dot_dimension_numbers<[1], [0], [0], [1], [0, 0, 1, 1], [], []>} : vector<8x32xf32>, vector<32x17xf32>, vector<8x17xf32> -> vector<8x17xf32>
    %c0_53 = arith.constant 0 : index
    %c0_54 = arith.constant 0 : index
    %86 = vector.load %arg17[%c0_53, %c0_54] : memref<32x17xf32, #tpu.memory_space<vmem>>, vector<32x17xf32>
    %cst_55 = arith.constant dense<0.000000e+00> : vector<8x17xf32>
    %87 = tpu.matmul %30, %86, %cst_55 {dimension_numbers = #tpu.dot_dimension_numbers<[1], [0], [0], [1], [0, 0, 1, 1], [], []>} : vector<8x32xf32>, vector<32x17xf32>, vector<8x17xf32> -> vector<8x17xf32>
    %88 = arith.addf %85, %87 : vector<8x17xf32>
    %c0_56 = arith.constant 0 : index
    %c0_57 = arith.constant 0 : index
    %89 = vector.load %arg18[%c0_56, %c0_57] : memref<1x17xf32, #tpu.memory_space<vmem>>, vector<1x17xf32>
    %90 = vector.broadcast %89 : vector<1x17xf32> to vector<8x17xf32>
    %91 = arith.addf %88, %90 : vector<8x17xf32>
    %c0_58 = arith.constant 0 : index
    %c0_59 = arith.constant 0 : index
    %92 = vector.load %arg19[%c0_58, %c0_59] : memref<8x17xf32, #tpu.memory_space<vmem>>, vector<8x17xf32>
    tpu.vector_store %arg19[%c0_58, %c0_59], %91 {strides = array<i32>} : memref<8x17xf32, #tpu.memory_space<vmem>>, vector<8x17xf32>,
    %c0_60 = arith.constant 0 : index
    %c0_61 = arith.constant 0 : index
    %93 = vector.load %arg20[%c0_60, %c0_61] : memref<8x32xf32, #tpu.memory_space<vmem>>, vector<8x32xf32>
    tpu.vector_store %arg20[%c0_60, %c0_61], %83 {strides = array<i32>} : memref<8x32xf32, #tpu.memory_space<vmem>>, vector<8x32xf32>,
    %c0_62 = arith.constant 0 : index
    %c0_63 = arith.constant 0 : index
    %94 = vector.load %arg21[%c0_62, %c0_63] : memref<8x32xf32, #tpu.memory_space<vmem>>, vector<8x32xf32>
    tpu.vector_store %arg21[%c0_62, %c0_63], %81 {strides = array<i32>} : memref<8x32xf32, #tpu.memory_space<vmem>>, vector<8x32xf32>,
    return
  }
  func.func @transform_0(%arg0: i32) -> (i32, i32) {
    %c0_i32 = arith.constant 0 : i32
    %c0_i32_0 = arith.constant 0 : i32
    return %arg0, %c0_i32 : i32, i32
  }
  func.func @transform_1(%arg0: i32) -> (i32, i32, i32) {
    %c0_i32 = arith.constant 0 : i32
    %c0_i32_0 = arith.constant 0 : i32
    %c0_i32_1 = arith.constant 0 : i32
    return %arg0, %c0_i32, %c0_i32_0 : i32, i32, i32
  }
  func.func @transform_2(%arg0: i32) -> (i32, i32) {
    %c0_i32 = arith.constant 0 : i32
    %c0_i32_0 = arith.constant 0 : i32
    return %arg0, %c0_i32 : i32, i32
  }
  func.func @transform_3(%arg0: i32) -> (i32, i32) {
    %c0_i32 = arith.constant 0 : i32
    %c0_i32_0 = arith.constant 0 : i32
    return %arg0, %c0_i32 : i32, i32
  }
  func.func @transform_4(%arg0: i32) -> (i32, i32) {
    %c0_i32 = arith.constant 0 : i32
    %c0_i32_0 = arith.constant 0 : i32
    return %arg0, %c0_i32 : i32, i32
  }
  func.func @transform_5(%arg0: i32) -> (i32, i32) {
    %c0_i32 = arith.constant 0 : i32
    %c0_i32_0 = arith.constant 0 : i32
    %c0_i32_1 = arith.constant 0 : i32
    return %c0_i32, %c0_i32_0 : i32, i32
  }
  func.func @transform_6(%arg0: i32) -> (i32, i32) {
    %c0_i32 = arith.constant 0 : i32
    %c0_i32_0 = arith.constant 0 : i32
    %c0_i32_1 = arith.constant 0 : i32
    return %c0_i32, %c0_i32_0 : i32, i32
  }
  func.func @transform_7(%arg0: i32) -> (i32, i32) {
    %c0_i32 = arith.constant 0 : i32
    %c0_i32_0 = arith.constant 0 : i32
    %c0_i32_1 = arith.constant 0 : i32
    return %c0_i32, %c0_i32_0 : i32, i32
  }
  func.func @transform_8(%arg0: i32) -> (i32, i32) {
    %c0_i32 = arith.constant 0 : i32
    %c0_i32_0 = arith.constant 0 : i32
    %c0_i32_1 = arith.constant 0 : i32
    return %c0_i32, %c0_i32_0 : i32, i32
  }
  func.func @transform_9(%arg0: i32) -> (i32, i32) {
    %c0_i32 = arith.constant 0 : i32
    %c0_i32_0 = arith.constant 0 : i32
    %c0_i32_1 = arith.constant 0 : i32
    return %c0_i32, %c0_i32_0 : i32, i32
  }
  func.func @transform_10(%arg0: i32) -> (i32, i32) {
    %c0_i32 = arith.constant 0 : i32
    %c0_i32_0 = arith.constant 0 : i32
    %c0_i32_1 = arith.constant 0 : i32
    return %c0_i32, %c0_i32_0 : i32, i32
  }
  func.func @transform_11(%arg0: i32) -> (i32, i32) {
    %c0_i32 = arith.constant 0 : i32
    %c0_i32_0 = arith.constant 0 : i32
    %c0_i32_1 = arith.constant 0 : i32
    return %c0_i32, %c0_i32_0 : i32, i32
  }
  func.func @transform_12(%arg0: i32) -> (i32, i32) {
    %c0_i32 = arith.constant 0 : i32
    %c0_i32_0 = arith.constant 0 : i32
    %c0_i32_1 = arith.constant 0 : i32
    return %c0_i32, %c0_i32_0 : i32, i32
  }
  func.func @transform_13(%arg0: i32) -> (i32, i32) {
    %c0_i32 = arith.constant 0 : i32
    %c0_i32_0 = arith.constant 0 : i32
    %c0_i32_1 = arith.constant 0 : i32
    return %c0_i32, %c0_i32_0 : i32, i32
  }
  func.func @transform_14(%arg0: i32) -> (i32, i32) {
    %c0_i32 = arith.constant 0 : i32
    %c0_i32_0 = arith.constant 0 : i32
    %c0_i32_1 = arith.constant 0 : i32
    return %c0_i32, %c0_i32_0 : i32, i32
  }
  func.func @transform_15(%arg0: i32) -> (i32, i32) {
    %c0_i32 = arith.constant 0 : i32
    %c0_i32_0 = arith.constant 0 : i32
    %c0_i32_1 = arith.constant 0 : i32
    return %c0_i32, %c0_i32_0 : i32, i32
  }
  func.func @transform_16(%arg0: i32) -> (i32, i32) {
    %c0_i32 = arith.constant 0 : i32
    %c0_i32_0 = arith.constant 0 : i32
    %c0_i32_1 = arith.constant 0 : i32
    return %c0_i32, %c0_i32_0 : i32, i32
  }
  func.func @transform_17(%arg0: i32) -> (i32, i32) {
    %c0_i32 = arith.constant 0 : i32
    %c0_i32_0 = arith.constant 0 : i32
    %c0_i32_1 = arith.constant 0 : i32
    return %c0_i32, %c0_i32_0 : i32, i32
  }
  func.func @transform_18(%arg0: i32) -> (i32, i32) {
    %c0_i32 = arith.constant 0 : i32
    %c0_i32_0 = arith.constant 0 : i32
    return %arg0, %c0_i32 : i32, i32
  }
  func.func @transform_19(%arg0: i32) -> (i32, i32) {
    %c0_i32 = arith.constant 0 : i32
    %c0_i32_0 = arith.constant 0 : i32
    return %arg0, %c0_i32 : i32, i32
  }
  func.func @transform_20(%arg0: i32) -> (i32, i32) {
    %c0_i32 = arith.constant 0 : i32
    %c0_i32_0 = arith.constant 0 : i32
    return %arg0, %c0_i32 : i32, i32
  }
  func.func @transform_21(%arg0: i32) -> (i32, i32) {
    %c0_i32 = arith.constant 0 : i32
    %c0_i32_0 = arith.constant 0 : i32
    return %arg0, %c0_i32 : i32, i32
  }
}

</mosaic_0001>

<bundles_post_ra>
// kernel: tpu_custom_call.1
= control target key start
LH: loop header
LB: loop body
LE: loop exit
PB: predicated region body
PF: predicated region fallthrough
CT: control target
= control target key end

     0   :  { %s2658_s0 = inlined_call_operand.hbm [shape: f32[8,32], index: 0, kind: input, shape index: {}]   ;;  %s2659_s1 = inlined_call_operand.hbm [shape: f32[8,16,32], index: 1, kind: input, shape index: {}]   ;;  %s2660_s2 = inlined_call_operand.hbm [shape: f32[8,16], index: 2, kind: input, shape index: {}]   ;;  %s2661_s3 = inlined_call_operand.hbm [shape: f32[8,32], index: 3, kind: input, shape index: {}]   ;;  %s2662_s4 = inlined_call_operand.hbm [shape: f32[8,32], index: 4, kind: input, shape index: {}]   ;;  %s2663_s5 = inlined_call_operand.vmem [shape: f32[32,32], index: 5, kind: input, shape index: {}]   ;;  %s2664_s6 = inlined_call_operand.vmem [shape: f32[1,32], index: 6, kind: input, shape index: {}]   ;;  %s2665_s7 = inlined_call_operand.hbm [shape: f32[16,32], index: 7, kind: input, shape index: {}]   ;;  %s2666_s8 = inlined_call_operand.hbm [shape: f32[1,32], index: 8, kind: input, shape index: {}]   ;;  %s2667_s9 = inlined_call_operand.vmem [shape: f32[32,32], index: 9, kind: input, shape index: {}]   ;;  %s2668_s10 = inlined_call_operand.hbm [shape: f32[1,32], index: 10, kind: input, shape index: {}]   ;;  %s2669_s11 = inlined_call_operand.vmem [shape: f32[32,128], index: 11, kind: input, shape index: {}]   ;;  %s2670_s12 = inlined_call_operand.hbm [shape: f32[32,128], index: 12, kind: input, shape index: {}]   ;;  %s2671_s13 = inlined_call_operand.hbm [shape: f32[32,128], index: 13, kind: input, shape index: {}]   ;;  %s2672_s14 = inlined_call_operand.vmem [shape: f32[1,128], index: 14, kind: input, shape index: {}]   ;;  %s2673_s15 = inlined_call_operand.vmem [shape: f32[32,17], index: 15, kind: input, shape index: {}]   ;;  %s2674_s16 = inlined_call_operand.vmem [shape: f32[32,17], index: 16, kind: input, shape index: {}]   ;;  %s2675_s17 = inlined_call_operand.vmem [shape: f32[1,17], index: 17, kind: input, shape index: {}]   ;;  %s2676_s18 = inlined_call_operand.hbm [shape: f32[8,17], index: 18, kind: output, shape index: {0}]   ;;  %s2677_s19 = inlined_call_operand.hbm [shape: f32[8,32], index: 19, kind: output, shape index: {1}]   ;;  %s2678_s20 = inlined_call_operand.hbm [shape: f32[8,32], index: 20, kind: output, shape index: {2}]   ;;  %s2679_s21 = inlined_call_operand.hbm [shape: f32[8,16], index: 21, kind: output, shape index: {3}]  }
   0x1   :  { %2689 = sst [smem:[#allocation34_spill]] %s2658_s0 }
   0x2   :  { %2690 = sst [smem:[#allocation35_spill]] %s2659_s1 }
   0x3   :  { %2691 = sst [smem:[#allocation36_spill]] %s2660_s2 }
   0x4   :  { %2692 = sst [smem:[#allocation37_spill]] %s2661_s3 }
   0x5   :  { %2693 = sst [smem:[#allocation38_spill]] %s2662_s4 }
   0x6   :  { %2694 = sst [smem:[#allocation39_spill]] %s2663_s5 }
   0x7   :  { %2695 = sst [smem:[#allocation40_spill]] %s2676_s18 }
   0x8   :  { %27 = vsyncpa [#allocation3], 0 }
   0x9   :  { %28 = vsyncpa [#allocation6], 0 }
   0xa   :  { %29 = vsyncpa [#allocation9], 0 }
   0xb   :  { %30 = vsyncpa [#allocation12], 0 }
   0xc   :  { %31 = vsyncpa [#allocation15], 0 }
   0xd   :  { %32 = vsyncpa [#allocation18], 0 }
   0xe   :  { %33 = vsyncpa [#allocation4], 0 }
   0xf   :  { %34 = vsyncpa [#allocation21], 0  ;;  %s2696_s26 = sld [smem:[#allocation35_spill]] }
  0x15   :  { %s51_s27 = sshll.u32 %s2696_s26, 4  ;;  %s52_s27 = int_to_ptr.hbm [resolvable:$true] %s51_s27 }
  0x16   :  { %35 = vsyncpa [#allocation24], 0  ;;  %s2002_s3 = smov [#allocation5]   ;;  %s2697_s4 = sld [smem:[#allocation37_spill]] }
  0x17   :  { %s53_s28 = sshll.u32 %s2002_s3, 4  ;;  %s2681_s5 = smov 128   ;;  %s54_s28 = int_to_ptr.vmem [resolvable:$true] %s53_s28 }
  0x18   :  { %s2683_s22 = smov 8   ;;  %s2005_s23 = smov [#allocation8]  }
  0x19   :  { %59 = dma.hbm_to_vmem [thread:$0]  %s52_s27, 2048, %s54_s28, [#allocation6], %s2681_s5, %s2681_s5, %s2683_s22  }
  0x1a   :  { %s78_s1 = sshll.u32 %s2005_s23, 4  ;;  %s101_s25 = sshll.u32 %s2665_s7, 4  ;;  %s79_s1 = int_to_ptr.vmem [resolvable:$true] %s78_s1  ;;  %s102_s25 = int_to_ptr.hbm [resolvable:$true] %s101_s25 }
  0x1b   :  { %s128_s29 = sshll.u32 %s2668_s10, 4  ;;  %s2006_s0 = smov [#allocation11]   ;;  %s129_s29 = int_to_ptr.hbm [resolvable:$true] %s128_s29 }
  0x1c   :  { %s76_s30 = sshll.u32 %s2697_s4, 4  ;;  %s103_s4 = sshll.u32 %s2006_s0, 4  ;;  %s77_s30 = int_to_ptr.hbm [resolvable:$true] %s76_s30  ;;  %s104_s4 = int_to_ptr.vmem [resolvable:$true] %s103_s4 }
  0x1d   :  { %81 = dma.hbm_to_vmem [thread:$0]  %s77_s30, 128, %s79_s1, [#allocation9]  }
  0x1e   :  { %109 = dma.hbm_to_vmem [thread:$0]  %s102_s25, 256, %s104_s4, [#allocation12], %s2681_s5, %s2681_s5, %s2683_s22  }
  0x1f   :  { %s2007_s27 = smov [#allocation14]   ;;  %s2698_s7 = sld [smem:[#allocation34_spill]] }
  0x20   :  { %s130_s28 = sshll.u32 %s2007_s27, 4  ;;  %s2699_s10 = sld [smem:[#allocation36_spill]]  ;;  %s131_s28 = int_to_ptr.vmem [resolvable:$true] %s130_s28 }
  0x21   :  { %133 = dma.hbm_to_vmem [thread:$0]  %s129_s29, 16, %s131_s28, [#allocation15]  }
  0x22   :  { %s2008_s3 = smov [#allocation2]   ;;  %s2009_s18 = smov [#allocation7]  }
  0x23   :  { %s43_s0 = sshll.u32 %s2008_s3, 4  ;;  %s67_s25 = sshll.u32 %s2009_s18, 4  ;;  %s44_s0 = int_to_ptr.vmem [resolvable:$true] %s43_s0  ;;  %s68_s25 = int_to_ptr.vmem [resolvable:$true] %s67_s25 }
  0x24   :  { %s2700_s5 = sld [smem:[#allocation38_spill]]  ;;  %s115_s28 = sshll.u32 %s2666_s8, 4  ;;  %s116_s28 = int_to_ptr.hbm [resolvable:$true] %s115_s28 }
  0x25   :  { %s41_s2 = sshll.u32 %s2698_s7, 4  ;;  %s2010_s24 = smov [#allocation10]   ;;  %s42_s2 = int_to_ptr.hbm [resolvable:$true] %s41_s2 }
  0x26   :  { %s65_s26 = sshll.u32 %s2699_s10, 4  ;;  %s89_s7 = sshll.u32 %s2010_s24, 4  ;;  %s66_s26 = int_to_ptr.hbm [resolvable:$true] %s65_s26  ;;  %s90_s7 = int_to_ptr.vmem [resolvable:$true] %s89_s7 }
  0x27   :  { %46 = dma.hbm_to_vmem [thread:$0]  %s42_s2, 128, %s44_s0, [#allocation3]  }
  0x28   :  { %70 = dma.hbm_to_vmem [thread:$0]  %s66_s26, 128, %s68_s25, [#allocation6]  }
  0x29   :  { %s2011_s30 = smov [#allocation13]   ;;  %s140_s10 = sshll.u32 %s2670_s12, 4  ;;  %s141_s10 = int_to_ptr.hbm [resolvable:$true] %s140_s10 }
  0x2a   :  { %s87_s22 = sshll.u32 %s2700_s5, 4  ;;  %s117_s2 = sshll.u32 %s2011_s30, 4  ;;  %s88_s22 = int_to_ptr.hbm [resolvable:$true] %s87_s22  ;;  %s118_s2 = int_to_ptr.vmem [resolvable:$true] %s117_s2 }
  0x2b   :  { %92 = dma.hbm_to_vmem [thread:$0]  %s88_s22, 128, %s90_s7, [#allocation9]  }
  0x2c   :  { %120 = dma.hbm_to_vmem [thread:$0]  %s116_s28, 16, %s118_s2, [#allocation12]  }
  0x2d   :  { %s153_s3 = sshll.u32 %s2671_s13, 4  ;;  %s2012_s0 = smov [#allocation16]   ;;  %s154_s3 = int_to_ptr.hbm [resolvable:$true] %s153_s3 }
  0x2e   :  { %s142_s8 = sshll.u32 %s2012_s0, 4  ;;  %s2701_s25 = smov 8   ;;  %s143_s8 = int_to_ptr.vmem [resolvable:$true] %s142_s8 }
  0x2f   :  { %s2702_s4 = smov 128   ;;  %s2013_s22 = smov [#allocation17]  }
  0x30   :  { %148 = dma.hbm_to_vmem [thread:$0]  %s141_s10, 512, %s143_s8, [#allocation15], %s2702_s4, %s2702_s4, %s2701_s25  }
  0x31   :  { %s155_s27 = sshll.u32 %s2013_s22, 4  ;;  %s156_s27 = int_to_ptr.vmem [resolvable:$true] %s155_s27 }
  0x32   :  { %161 = dma.hbm_to_vmem [thread:$0]  %s154_s3, 512, %s156_s27, [#allocation18], %s2702_s4, %s2702_s4, %s2701_s25  }
  0x33   :  { %1984 = dma.done.wait [#allocation3], 128  }
  0x34   :  { %1985 = vsyncadd [#allocation3], 4294967168 }
  0x35   :  { %1986 = dma.done.wait [#allocation6], 2176  }
  0x36   :  { %1987 = vsyncadd [#allocation6], 4294965120 }
  0x37   :  { %1988 = dma.done.wait [#allocation9], 256  }
  0x38   :  { %1989 = vsyncadd [#allocation9], 4294967040 }
  0x39   :  { %1990 = dma.done.wait [#allocation12], 272  }
  0x3a   :  { %1991 = vsyncadd [#allocation12], 4294967024 }
  0x3b   :  { %1992 = dma.done.wait [#allocation15], 528  }
  0x3c   :  { %1993 = vsyncadd [#allocation15], 4294966768 }
  0x3d   :  { %1994 = dma.done.wait [#allocation18], 512  }
  0x3e   :  { %1995 = vsyncadd [#allocation18], 4294966784  ;;  %s2703_s23 = sld [smem:[#allocation39_spill]]  ;;  %v212_v4 = vld [vmem:[#allocation5] sm:$0xff]  ;;  %vm2685_vm0 = vcmask 261120   ;;  %v223_v6 = vld [vmem:[#allocation5 + $0x58] sm:$0xff] }
  0x3f   :  { %v220_v5 = vld [vmem:[#allocation5 + $0x40] sm:$0xff]  ;;  %v217_v7 = vld [vmem:[#allocation5 + $0x28] sm:$0xff]  ;;  %v226_v12 = vld [vmem:[#allocation5 + $0x70] sm:$0xff]  ;;  %vm490_vm1 = vcmask 130112   ;;  %vm513_vm2 = vcmask 1041409   ;;  %vm515_vm3 = vcmask 1042434  }
  0x40   :  { %v216_v8 = vld [vmem:[#allocation5 + $0x20] sm:$0xff]  ;;  %v213_v9 = vld [vmem:[#allocation5 + $0x8] sm:$0xff]  ;;  %v222_v13 = vld [vmem:[#allocation5 + $0x50] sm:$0xff]  ;;  %vm517_vm4 = vcmask 1043459   ;;  %vm519_vm5 = vcmask 1044484   ;;  %vm2688_vm6 = vcmask 1045509  }
  0x41   :  { %v221_v10 = vld [vmem:[#allocation5 + $0x48] sm:$0xff]  ;;  %v224_v11 = vld [vmem:[#allocation5 + $0x60] sm:$0xff]  ;;  %v214_v14 = vld [vmem:[#allocation5 + $0x10] sm:$0xff]  ;;  %vm2687_vm7 = vcmask 1046534   ;;  %vm2686_vm8 = vcmask 1047559   ;;  %vm528_vm9 = vcmask 130048  }
  0x42   :  { %v227_v15 = vld [vmem:[#allocation5 + $0x78] sm:$0xff]  ;;  %v225_v17 = vld [vmem:[#allocation5 + $0x68] sm:$0xff]  ;;  %v218_v18 = vld [vmem:[#allocation5 + $0x30] sm:$0xff]  ;;  %s2016_s5 = smov 64   ;;  %s1437_s13 = sshll.u32 %s2677_s19, 4  ;;  %s1438_s13 = int_to_ptr.hbm [resolvable:$true] %s1437_s13 }
  0x43   :  { %v215_v16 = vld [vmem:[#allocation5 + $0x18] sm:$0xff]  ;;  %s1448_s24 = sshll.u32 %s2678_s20, 4  ;;  %s2019_s7 = smov [#allocation22]   ;;  %s1449_s24 = int_to_ptr.hbm [resolvable:$true] %s1448_s24 }
  0x44   :  { %v231_v0 = vld [vmem:[%s2703_s23 + $0x18] sm:$0xff]  ;;  %v230_v1 = vld [vmem:[%s2703_s23 + $0x10] sm:$0xff]  ;;  %v229_v2 = vld [vmem:[%s2703_s23 + $0x8] sm:$0xff]  ;;  %s1446_s30 = sshll.u32 %s2019_s7, 4  ;;  %s1459_s19 = sshll.u32 %s2679_s21, 4  ;;  %s1447_s30 = int_to_ptr.vmem [resolvable:$true] %s1446_s30  ;;  %s1460_s19 = int_to_ptr.hbm [resolvable:$true] %s1459_s19 }
  0x45   :  { %293 = vmatpush.msra.mxu0 %v231_v0  ;;  %1520 = vmatpush.msra.mxu1 %v231_v0  ;;  %v228_v3 = vld [vmem:[%s2703_s23] sm:$0xff]  ;;  %s2018_s23 = smov [#allocation20]   ;;  %s2021_s20 = smov [#allocation19]  }
  0x46   :  { %1521 = vmatpush.msra.mxu2 %v231_v0  ;;  %1522 = vmatpush.msra.mxu3 %v231_v0  ;;  %v219_v19 = vld [vmem:[#allocation5 + $0x38] sm:$0xff]  ;;  %s1424_s10 = sshll.u32 %s2021_s20, 4  ;;  %s2720_s26 = sld [smem:[#allocation40_spill]]  ;;  %s1425_s10 = int_to_ptr.vmem [resolvable:$true] %s1424_s10 }
  0x47   :  { %294 = vmatpush.msra.mxu0 %v230_v1  ;;  %1523 = vmatpush.msra.mxu1 %v230_v1  ;;  %v2202_v20 = vld [vmem:[#allocation2] sm:$0xff] }
  0x48   :  { %1524 = vmatpush.msra.mxu2 %v230_v1  ;;  %1525 = vmatpush.msra.mxu3 %v230_v1  ;;  %v350_v21 = vrot.slane %v2202_v20, 4  ;;  %v354_v22 = vperm.slane %v2202_v20, 0  ;;  %v351_v28 = vrot.slane %v2202_v20, 5  ;;  %v2210_v29 = vld [vmem:[%s2664_s6] ss:$0 sm:$0xff]  ;;  %v347_v35 = vrot.slane %v2202_v20, 1 }
  0x49   :  { %295 = vmatpush.msra.mxu0 %v229_v2  ;;  %1526 = vmatpush.msra.mxu1 %v229_v2  ;;  %v352_v41 = vrot.slane %v2202_v20, 6  ;;  %v348_v63 = vrot.slane %v2202_v20, 2 }
  0x4a   :  { %1527 = vmatpush.msra.mxu2 %v229_v2  ;;  %1528 = vmatpush.msra.mxu3 %v229_v2  ;;  %v358_v23 = vperm.slane %v350_v21, 0  ;;  %v359_v30 = vperm.slane %v351_v28, 0  ;;  %v355_v44 = vperm.slane %v347_v35, 0 }
  0x4b   :  { %296 = vmatpush.msra.mxu0 %v228_v3  ;;  %1529 = vmatpush.msra.mxu1 %v228_v3  ;;  %v2218_v46 = vperm.slane %v352_v41, 0 }
  0x4c   :  { %1488 = vmatmul.msk.f32.vlgmr.msra.gmra.mxu0 %vm2685_vm0, %v212_v4  ;;  %1496 = vmatmul.msk.f32.vlgmr.msra.gmra.mxu1 %vm2685_vm0, %v220_v5  ;;  %s1426_s3 = sshll.u32 %s2720_s26, 4  ;;  %s1427_s3 = int_to_ptr.hbm [resolvable:$true] %s1426_s3 }
  0x4d   :  { %1530 = vmatpush.msra.mxu2 %v228_v3  ;;  %1531 = vmatpush.msra.mxu3 %v228_v3 }
  0x4e   :  { %1499 = vmatmul.msk.f32.vlgmr.msra.gmra.mxu2 %vm2685_vm0, %v223_v6  ;;  %1502 = vmatmul.msk.f32.vlgmr.msra.gmra.mxu3 %vm2685_vm0, %v226_v12 }
  0x4f   :  { %1014 = vmatpush.msrb.mxu3 %v217_v7 }
  0x51   :  { %1015 = vmatpush.msrb.mxu3 %v216_v8 }
  0x53   :  { %1080 = vmatpush.msra.mxu3 %v223_v6  ;;  %v356_v6 = vperm.slane %v348_v63, 0 }
  0x54   :  { %1489 = vmatmul.msk.f32.gmra.mxu0 %vm2685_vm0, %v213_v9  ;;  %1497 = vmatmul.msk.f32.gmra.mxu1 %vm2685_vm0, %v221_v10 }
  0x55   :  { %1081 = vmatpush.msra.mxu3 %v222_v13 }
  0x56   :  { %1500 = vmatmul.msk.f32.gmra.mxu2 %vm2685_vm0, %v224_v11  ;;  %1503 = vmatmul.msk.f32.gmra.mxu3 %vm2685_vm0, %v227_v15  ;;  %v353_v11 = vrot.slane %v2202_v20, 7 }
  0x5c   :  { %1490 = vmatmul.msk.f32.gmra.mxu0 %vm2685_vm0, %v214_v14  ;;  %1498 = vmatmul.msk.f32.gmra.mxu1 %vm2685_vm0, %v222_v13 }
  0x5e   :  { %1501 = vmatmul.msk.f32.gmra.mxu2 %vm2685_vm0, %v225_v17 }
  0x64   :  { %1491 = vmatmul.msk.f32.gmra.mxu0 %vm2685_vm0, %v215_v16  ;;  %v361_v16 = vperm.slane %v353_v11, 0 }
  0x6c   :  { %1492 = vmatmul.msk.f32.gmra.mxu0 %vm2685_vm0, %v216_v8 }
  0x74   :  { %1493 = vmatmul.msk.f32.gmra.mxu0 %vm2685_vm0, %v217_v7 }
  0x7c   :  { %1494 = vmatmul.msk.f32.gmra.mxu0 %vm2685_vm0, %v218_v18 }
  0x84   :  { %1495 = vmatmul.msk.f32.gmra.mxu0 %vm2685_vm0, %v219_v19 }
  0xc9   :  { %v298_v24 = vpop.f32.mrf.mxu0  ;;  %v322_v25 = vpop.f32.mrf.mxu1 }
  0xca   :  { %v370_v26 = vadd.f32 %v354_v22, %v298_v24  ;;  %v378_v27 = vadd.f32 %v358_v23, %v322_v25 }
  0xcc   :  { %1560 = vtanh.f32 %v370_v26 }
  0xcd   :  { %1562 = vtanh.f32 %v378_v27 }
  0xd1   :  { %v301_v31 = vpop.f32.mrf.mxu0  ;;  %v325_v32 = vpop.f32.mrf.mxu1 }
  0xd2   :  { %v1561_v33 = vpop.eup %1560  ;;  %v371_v34 = vadd.f32 %v354_v22, %v301_v31  ;;  %v379_v36 = vadd.f32 %v358_v23, %v325_v32  ;;  %v331_v37 = vpop.f32.mrf.mxu2  ;;  %v349_v22 = vrot.slane %v2202_v20, 3 }
  0xd3   :  { %v1563_v38 = vpop.eup %1562  ;;  %v405_v39 = vmul.f32 %v1561_v33, %v2210_v29  ;;  %v381_v40 = vadd.f32 %v359_v30, %v331_v37  ;;  %v340_v14 = vpop.f32.mrf.mxu3 }
  0xd4   :  { %1564 = vtanh.f32 %v371_v34  ;;  %v413_v42 = vmul.f32 %v1563_v38, %v2210_v29  ;;  %v384_v23 = vadd.f32 %v361_v16, %v340_v14  ;;  %v357_v27 = vperm.slane %v349_v22, 0 }
  0xd5   :  { %v421_v43 = vsel %vm2685_vm0, %v405_v39, 0.0  ;;  %1566 = vtanh.f32 %v379_v36 }
  0xd6   :  { %422 = vadd.xlane.f32.xlu0 %v421_v43  ;;  %1568 = vtanh.f32 %v381_v40  ;;  %v445_v45 = vsel %vm2685_vm0, %v413_v42, 0.0 }
  0xd7   :  { %446 = vadd.xlane.f32.xlu2 %v445_v45 }
  0xd9   :  { %v304_v47 = vpop.f32.mrf.mxu0  ;;  %v328_v48 = vpop.f32.mrf.mxu1 }
  0xda   :  { %v1565_v49 = vpop.eup %1564  ;;  %v372_v50 = vadd.f32 %v355_v44, %v304_v47  ;;  %v380_v51 = vadd.f32 %v359_v30, %v328_v48  ;;  %v334_v52 = vpop.f32.mrf.mxu2 }
  0xdb   :  { %v1567_v53 = vpop.eup %1566  ;;  %v406_v54 = vmul.f32 %v1565_v49, %v2210_v29  ;;  %v382_v55 = vadd.f32 %v2218_v46, %v334_v52  ;;  %v343_v28 = vpop.f32.mrf.mxu3 }
  0xdc   :  { %v1569_v56 = vpop.eup %1568  ;;  %1570 = vtanh.f32 %v372_v50  ;;  %v414_v59 = vmul.f32 %v1567_v53, %v2210_v29  ;;  %v385_v33 = vadd.f32 %v361_v16, %v343_v28 }
  0xdd   :  { %v424_v57 = vsel %vm2685_vm0, %v406_v54, 0.0  ;;  %1572 = vtanh.f32 %v380_v51  ;;  %v416_v58 = vmul.f32 %v1569_v56, %v2210_v29 }
  0xde   :  { %425 = vadd.xlane.f32.xlu0 %v424_v57  ;;  %1574 = vtanh.f32 %v382_v55  ;;  %v448_v2 = vsel %vm2685_vm0, %v414_v59, 0.0 }
  0xdf   :  { %v454_v60 = vsel %vm2685_vm0, %v416_v58, 0.0 }
  0xe0   :  { %455 = vadd.xlane.f32.xlu2 %v454_v60 }
  0xe1   :  { %v307_v61 = vpop.f32.mrf.mxu0 }
  0xe2   :  { %v1571_v62 = vpop.eup %1570  ;;  %v373_v4 = vadd.f32 %v355_v44, %v307_v61  ;;  %v337_v36 = vpop.f32.mrf.mxu2 }
  0xe3   :  { %v1573_v0 = vpop.eup %1572  ;;  %v407_v1 = vmul.f32 %v1571_v62, %v2210_v29  ;;  %v383_v41 = vadd.f32 %v2218_v46, %v337_v36  ;;  %v485_v62 = vlaneseq }
  0xe4   :  { %v1575_v3 = vpop.eup %1574  ;;  %v415_v7 = vmul.f32 %v1573_v0, %v2210_v29  ;;  %1576 = vtanh.f32 %v373_v4 }
  0xe5   :  { %v427_v5 = vsel %vm2685_vm0, %v407_v1, 0.0  ;;  %v417_v8 = vmul.f32 %v1575_v3, %v2210_v29  ;;  %v2271_v63 = vand.u32 127, %v485_v62 }
  0xe6   :  { %428 = vadd.xlane.f32.xlu1 %v427_v5  ;;  %449 = vadd.xlane.f32.xlu0 %v448_v2  ;;  %v451_v12 = vsel %vm2685_vm0, %v415_v7, 0.0 }
  0xe7   :  { %v457_v13 = vsel %vm2685_vm0, %v417_v8, 0.0  ;;  %v2276_v1 = vadd.s32 4294967288, %v2271_v63 }
  0xe9   :  { %v310_v9 = vpop.f32.mrf.mxu0 }
  0xea   :  { %v374_v10 = vadd.f32 %v356_v6, %v310_v9  ;;  %v1577_v15 = vpop.eup %1576 }
  0xeb   :  { %v408_v18 = vmul.f32 %v1577_v15, %v2210_v29 }
  0xec   :  { %1578 = vtanh.f32 %v374_v10 }
  0xed   :  { %v430_v26 = vsel %vm2685_vm0, %v408_v18, 0.0 }
  0xee   :  { %452 = vadd.xlane.f32.xlu1 %v451_v12  ;;  %458 = vadd.xlane.f32.xlu0 %v457_v13 }
  0xf1   :  { %v313_v17 = vpop.f32.mrf.mxu0 }
  0xf2   :  { %v1579_v19 = vpop.eup %1578  ;;  %v375_v21 = vadd.f32 %v356_v6, %v313_v17 }
  0xf3   :  { %v409_v24 = vmul.f32 %v1579_v19, %v2210_v29 }
  0xf4   :  { %1580 = vtanh.f32 %v375_v21 }
  0xf5   :  { %v433_v25 = vsel %vm2685_vm0, %v409_v24, 0.0  ;;  %1582 = vtanh.f32 %v384_v23 }
  0xf6   :  { %434 = vadd.xlane.f32.xlu2 %v433_v25  ;;  %431 = vadd.xlane.f32.xlu1 %v430_v26 }
  0xf9   :  { %v316_v30 = vpop.f32.mrf.mxu0 }
  0xfa   :  { %v1581_v31 = vpop.eup %1580  ;;  %v376_v32 = vadd.f32 %v357_v27, %v316_v30 }
  0xfb   :  { %v410_v34 = vmul.f32 %v1581_v31, %v2210_v29  ;;  %v1583_v20 = vpop.eup %1582 }
  0xfc   :  { %1584 = vtanh.f32 %v376_v32  ;;  %v419_v37 = vmul.f32 %v1583_v20, %v2210_v29 }
  0xfd   :  { %v436_v35 = vsel %vm2685_vm0, %v410_v34, 0.0  ;;  %1586 = vtanh.f32 %v385_v33 }
  0xfe   :  { %437 = vadd.xlane.f32.xlu2 %v436_v35  ;;  %v463_v43 = vsel %vm2685_vm0, %v419_v37, 0.0 }
 0x101   :  { %v319_v38 = vpop.f32.mrf.mxu0 }
 0x102   :  { %v1585_v39 = vpop.eup %1584  ;;  %v377_v40 = vadd.f32 %v357_v27, %v319_v38 }
 0x103   :  { %v411_v42 = vmul.f32 %v1585_v39, %v2210_v29  ;;  %v1587_v44 = vpop.eup %1586 }
 0x104   :  { %1588 = vtanh.f32 %v377_v40  ;;  %v420_v47 = vmul.f32 %v1587_v44, %v2210_v29 }
 0x105   :  { %v439_v45 = vsel %vm2685_vm0, %v411_v42, 0.0  ;;  %1590 = vtanh.f32 %v383_v41  ;;  %v2014_v41 = vmov 0  }
 0x106   :  { %440 = vadd.xlane.f32.xlu0 %v439_v45  ;;  %464 = vadd.xlane.f32.xlu2 %v463_v43  ;;  %v466_v50 = vsel %vm2685_vm0, %v420_v47, 0.0 }
 0x107   :  { %1554 = vset.pattern.permute.xlu1 %v2014_v41  ;;  %1553 = vset.pattern.permute.xlu0 %v2014_v41 }
 0x108   :  { %1552 = vset.pattern.permute.xlu2 %v2014_v41 }
 0x10a   :  { %v1589_v48 = vpop.eup %1588 }
 0x10b   :  { %v412_v49 = vmul.f32 %v1589_v48, %v2210_v29  ;;  %v1591_v51 = vpop.eup %1590 }
 0x10c   :  { %v418_v52 = vmul.f32 %v1591_v51, %v2210_v29 }
 0x10d   :  { %v442_v46 = vsel %vm2685_vm0, %v412_v49, 0.0 }
 0x10e   :  { %443 = vadd.xlane.f32.xlu1 %v442_v46  ;;  %467 = vadd.xlane.f32.xlu0 %v466_v50  ;;  %v460_v53 = vsel %vm2685_vm0, %v418_v52, 0.0 }
 0x116   :  { %461 = vadd.xlane.f32.xlu1 %v460_v53 }
 0x149   :  { %v2253_v54 = vpop.xlane.xlu0 %422 }
 0x14a   :  { %v2255_v55 = vpop.xlane.xlu2 %446  ;;  %v487_v9 = vperm.slane %v2253_v54, %v2271_v63 }
 0x14b   :  { %v501_v16 = vperm.slane %v2255_v55, %v2271_v63 }
 0x151   :  { %v2257_v56 = vpop.xlane.xlu0 %425 }
 0x152   :  { %v489_v6 = vperm.slane %v2257_v56, %v2276_v1 }
 0x153   :  { %v2261_v58 = vpop.xlane.xlu2 %455 }
 0x154   :  { %v491_v15 = vsel %vm490_vm1, %v489_v6, %v487_v9  ;;  %v505_v25 = vperm.slane %v2261_v58, %v2276_v1 }
 0x159   :  { %v2259_v57 = vpop.xlane.xlu1 %428  ;;  %v2263_v59 = vpop.xlane.xlu0 %449 }
 0x15a   :  { %v492_v7 = vperm.slane %v2259_v57, %v2271_v63  ;;  %v502_v17 = vperm.slane %v2263_v59, %v2276_v1 }
 0x15c   :  { %v503_v27 = vsel %vm490_vm1, %v502_v17, %v501_v16 }
 0x161   :  { %v2265_v60 = vpop.xlane.xlu1 %452  ;;  %v2269_v29 = vpop.xlane.xlu0 %458 }
 0x162   :  { %v504_v26 = vperm.slane %v2265_v60, %v2271_v63  ;;  %v507_v33 = vperm.slane %v2269_v29, %v2271_v63 }
 0x164   :  { %v506_v20 = vsel %vm490_vm1, %v505_v25, %v504_v26 }
 0x169   :  { %v2267_v61 = vpop.xlane.xlu2 %434  ;;  %v2273_v0 = vpop.xlane.xlu1 %431 }
 0x16a   :  { %v493_v4 = vperm.slane %v2273_v0, %v2276_v1  ;;  %v495_v8 = vperm.slane %v2267_v61, %v2271_v63 }
 0x16c   :  { %v494_v10 = vsel %vm490_vm1, %v493_v4, %v492_v7 }
 0x16d   :  { %v514_v18 = vsel %vm513_vm2, %v494_v10, %v491_v15 }
 0x171   :  { %v2278_v2 = vpop.xlane.xlu2 %437 }
 0x172   :  { %v496_v5 = vperm.slane %v2278_v2, %v2276_v1 }
 0x174   :  { %v497_v12 = vsel %vm490_vm1, %v496_v5, %v495_v8 }
 0x175   :  { %v516_v21 = vsel %vm515_vm3, %v497_v12, %v514_v18 }
 0x179   :  { %v2280_v3 = vpop.xlane.xlu0 %440  ;;  %v2313_v24 = vpop.xlane.xlu2 %464 }
 0x17a   :  { %v498_v13 = vperm.slane %v2280_v3, %v2271_v63  ;;  %v510_v30 = vperm.slane %v2313_v24, %v2271_v63 }
 0x181   :  { %v2295_v11 = vpop.xlane.xlu1 %443  ;;  %v2311_v23 = vpop.xlane.xlu0 %467 }
 0x182   :  { %v499_v14 = vperm.slane %v2295_v11, %v2276_v1  ;;  %v511_v28 = vperm.slane %v2311_v23, %v2276_v1 }
 0x184   :  { %v500_v19 = vsel %vm490_vm1, %v499_v14, %v498_v13  ;;  %v512_v37 = vsel %vm490_vm1, %v511_v28, %v510_v30 }
 0x185   :  { %v518_v22 = vsel %vm517_vm4, %v500_v19, %v516_v21 }
 0x186   :  { %v520_v32 = vsel %vm519_vm5, %v503_v27, %v518_v22 }
 0x187   :  { %v522_v36 = vsel %vm2688_vm6, %v506_v20, %v520_v32 }
 0x189   :  { %v2324_v31 = vpop.xlane.xlu1 %461 }
 0x18a   :  { %v508_v34 = vperm.slane %v2324_v31, %v2276_v1 }
 0x18c   :  { %v509_v35 = vsel %vm490_vm1, %v508_v34, %v507_v33 }
 0x18d   :  { %v524_v38 = vsel %vm2687_vm7, %v509_v35, %v522_v36 }
 0x18e   :  { %v526_v39 = vsel %vm2686_vm8, %v512_v37, %v524_v38 }
 0x18f   :  { %v529_v40 = vsel %vm528_vm9, %v526_v39, -inf }
 0x190   :  { %530 = vmax.xlane.f32.xlu1 %v529_v40 }
 0x203   :  { %v2338_v42 = vpop.xlane.xlu1 %530 }
 0x204   :  { %v534_v43 = vperm.slane %v2338_v42, 1  ;;  %v533_v44 = vperm.slane %v2338_v42, 0  ;;  %v535_v49 = vperm.slane %v2338_v42, 2  ;;  %v537_v50 = vperm.slane %v2338_v42, 4 }
 0x205   :  { %v538_v5 = vperm.slane %v2338_v42, 5  ;;  %v540_v13 = vperm.slane %v2338_v42, 7  ;;  %v539_v19 = vperm.slane %v2338_v42, 6 }
 0x206   :  { %v551_v45 = vsub.f32 %v2259_v57, %v534_v43  ;;  %v550_v47 = vsub.f32 %v2257_v56, %v533_v44  ;;  %v549_v48 = vsub.f32 %v2253_v54, %v533_v44  ;;  %v554_v53 = vsub.f32 %v2278_v2, %v535_v49 }
 0x207   :  { %v557_v62 = vsub.f32 %v2255_v55, %v537_v50  ;;  %v552_v57 = vsub.f32 %v2273_v0, %v534_v43  ;;  %v536_v56 = vperm.slane %v2338_v42, 3  ;;  %v560_v0 = vsub.f32 %v2261_v58, %v538_v5 }
 0x208   :  { %v569_v51 = vmul.f32 1.442695, %v551_v45  ;;  %v567_v46 = vmul.f32 1.442695, %v550_v47  ;;  %v565_v52 = vmul.f32 1.442695, %v549_v48  ;;  %v553_v9 = vsub.f32 %v2267_v61, %v535_v49 }
 0x209   :  { %v575_v4 = vmul.f32 1.442695, %v554_v53  ;;  %v581_v54 = vmul.f32 1.442695, %v557_v62  ;;  %v571_v7 = vmul.f32 1.442695, %v552_v57  ;;  %v556_v55 = vsub.f32 %v2295_v11, %v536_v56 }
 0x20a   :  { %1592 = vpow2.f32 %v569_v51  ;;  %v587_v12 = vmul.f32 1.442695, %v560_v0  ;;  %v573_v15 = vmul.f32 1.442695, %v553_v9  ;;  %v559_v58 = vsub.f32 %v2265_v60, %v538_v5 }
 0x20b   :  { %1594 = vpow2.f32 %v567_v46  ;;  %v579_v10 = vmul.f32 1.442695, %v556_v55  ;;  %v563_v61 = vsub.f32 %v2313_v24, %v540_v13  ;;  %v555_v17 = vsub.f32 %v2280_v3, %v536_v56 }
 0x20c   :  { %1596 = vpow2.f32 %v565_v52  ;;  %v585_v18 = vmul.f32 1.442695, %v559_v58  ;;  %v562_v24 = vsub.f32 %v2324_v31, %v539_v19  ;;  %v558_v3 = vsub.f32 %v2263_v59, %v537_v50 }
 0x20d   :  { %1598 = vpow2.f32 %v575_v4  ;;  %v593_v21 = vmul.f32 1.442695, %v563_v61  ;;  %v577_v25 = vmul.f32 1.442695, %v555_v17  ;;  %v561_v31 = vsub.f32 %v2269_v29, %v539_v19 }
 0x20e   :  { %1600 = vpow2.f32 %v581_v54  ;;  %v591_v27 = vmul.f32 1.442695, %v562_v24  ;;  %v583_v30 = vmul.f32 1.442695, %v558_v3  ;;  %v564_v35 = vsub.f32 %v2311_v23, %v540_v13 }
 0x20f   :  { %1602 = vpow2.f32 %v571_v7  ;;  %v589_v59 = vmul.f32 1.442695, %v561_v31 }
 0x210   :  { %v2352_v6 = vpop.eup %1592  ;;  %1604 = vpow2.f32 %v579_v10  ;;  %v595_v36 = vmul.f32 1.442695, %v564_v35 }
 0x211   :  { %v2354_v8 = vpop.eup %1594  ;;  %620 = vperm.xlu1 %1554, %v2352_v6   ;;  %1606 = vpow2.f32 %v587_v12 }
 0x212   :  { %v2357_v2 = vpop.eup %1596  ;;  %617 = vperm.xlu0 %1553, %v2354_v8   ;;  %1608 = vpow2.f32 %v573_v15 }
 0x213   :  { %614 = vperm.xlu2 %1552, %v2357_v2   ;;  %v2365_v14 = vpop.eup %1598  ;;  %1610 = vpow2.f32 %v585_v18 }
 0x214   :  { %v2367_v16 = vpop.eup %1600  ;;  %1612 = vpow2.f32 %v593_v21 }
 0x215   :  { %v2370_v11 = vpop.eup %1602  ;;  %1614 = vpow2.f32 %v577_v25 }
 0x216   :  { %v2378_v22 = vpop.eup %1604  ;;  %1616 = vpow2.f32 %v591_v27 }
 0x217   :  { %v2380_v26 = vpop.eup %1606  ;;  %1618 = vpow2.f32 %v583_v30 }
 0x218   :  { %v2383_v60 = vpop.eup %1608  ;;  %1620 = vpow2.f32 %v589_v59 }
 0x219   :  { %629 = vperm.xlu1 %1554, %v2365_v14   ;;  %v2389_v28 = vpop.eup %1610  ;;  %1622 = vpow2.f32 %v595_v36 }
 0x21a   :  { %638 = vperm.xlu0 %1553, %v2367_v16   ;;  %v2391_v32 = vpop.eup %1612 }
 0x21b   :  { %623 = vperm.xlu2 %1552, %v2370_v11   ;;  %v2394_v33 = vpop.eup %1614 }
 0x21c   :  { %v2399_v34 = vpop.eup %1616 }
 0x21d   :  { %v2402_v20 = vpop.eup %1618 }
 0x21e   :  { %v2406_v37 = vpop.eup %1620 }
 0x21f   :  { %v2409_v38 = vpop.eup %1622 }
 0x221   :  { %635 = vperm.xlu1 %1554, %v2378_v22  }
 0x222   :  { %647 = vperm.xlu0 %1553, %v2380_v26  }
 0x223   :  { %626 = vperm.xlu2 %1552, %v2383_v60  }
 0x229   :  { %644 = vperm.xlu1 %1554, %v2389_v28  }
 0x22a   :  { %656 = vperm.xlu0 %1553, %v2391_v32  }
 0x22b   :  { %632 = vperm.xlu2 %1552, %v2394_v33  }
 0x231   :  { %653 = vperm.xlu1 %1554, %v2399_v34  }
 0x233   :  { %641 = vperm.xlu2 %1552, %v2402_v20  }
 0x23b   :  { %650 = vperm.xlu2 %1552, %v2406_v37  }
 0x243   :  { %659 = vperm.xlu2 %1552, %v2409_v38  }
 0x26d   :  { %v615_v29 = vpop.permute.xlu2 %614 }
 0x26e   :  { %v661_v52 = vperm.slane %v615_v29, %v2271_v63 }
 0x275   :  { %v624_v39 = vpop.permute.xlu2 %623 }
 0x276   :  { %v665_v53 = vperm.slane %v624_v39, %v2276_v1 }
 0x27d   :  { %v627_v40 = vpop.permute.xlu2 %626 }
 0x27e   :  { %v667_v4 = vperm.slane %v627_v40, %v2271_v63 }
 0x283   :  { %v621_v41 = vpop.permute.xlu1 %620 }
 0x284   :  { %v618_v42 = vpop.permute.xlu0 %617  ;;  %v664_v50 = vperm.slane %v621_v41, %v2271_v63 }
 0x285   :  { %v633_v43 = vpop.permute.xlu2 %632  ;;  %v662_v51 = vperm.slane %v618_v42, %v2276_v1 }
 0x286   :  { %v666_v56 = vsel %vm490_vm1, %v665_v53, %v664_v50  ;;  %v670_v5 = vperm.slane %v633_v43, %v2271_v63 }
 0x287   :  { %v663_v54 = vsel %vm490_vm1, %v662_v51, %v661_v52 }
 0x288   :  { %v685_v9 = vsel %vm513_vm2, %v666_v56, %v663_v54 }
 0x28b   :  { %v630_v44 = vpop.permute.xlu1 %629 }
 0x28c   :  { %v639_v45 = vpop.permute.xlu0 %638  ;;  %v668_v46 = vperm.slane %v630_v44, %v2276_v1 }
 0x28d   :  { %v642_v47 = vpop.permute.xlu2 %641  ;;  %v673_v10 = vperm.slane %v639_v45, %v2271_v63 }
 0x28e   :  { %v669_v7 = vsel %vm490_vm1, %v668_v46, %v667_v4  ;;  %v674_v12 = vperm.slane %v642_v47, %v2276_v1 }
 0x28f   :  { %v686_v58 = vsel %vm515_vm3, %v669_v7, %v685_v9 }
 0x290   :  { %v675_v24 = vsel %vm490_vm1, %v674_v12, %v673_v10 }
 0x293   :  { %v636_v23 = vpop.permute.xlu1 %635 }
 0x294   :  { %v648_v48 = vpop.permute.xlu0 %647  ;;  %v671_v62 = vperm.slane %v636_v23, %v2276_v1 }
 0x295   :  { %v651_v49 = vpop.permute.xlu2 %650  ;;  %v677_v61 = vperm.slane %v648_v48, %v2276_v1 }
 0x296   :  { %v672_v55 = vsel %vm490_vm1, %v671_v62, %v670_v5  ;;  %v679_v3 = vperm.slane %v651_v49, %v2271_v63 }
 0x297   :  { %v687_v17 = vsel %vm517_vm4, %v672_v55, %v686_v58 }
 0x298   :  { %v688_v30 = vsel %vm519_vm5, %v675_v24, %v687_v17 }
 0x29b   :  { %v645_v57 = vpop.permute.xlu1 %644 }
 0x29c   :  { %v676_v0 = vperm.slane %v645_v57, %v2271_v63  ;;  %v657_v13 = vpop.permute.xlu0 %656 }
 0x29d   :  { %v660_v15 = vpop.permute.xlu2 %659  ;;  %v682_v19 = vperm.slane %v657_v13, %v2271_v63 }
 0x29e   :  { %v678_v18 = vsel %vm490_vm1, %v677_v61, %v676_v0  ;;  %v683_v21 = vperm.slane %v660_v15, %v2276_v1 }
 0x29f   :  { %v689_v59 = vsel %vm2688_vm6, %v678_v18, %v688_v30 }
 0x2a0   :  { %v684_v35 = vsel %vm490_vm1, %v683_v21, %v682_v19 }
 0x2a3   :  { %v654_v25 = vpop.permute.xlu1 %653 }
 0x2a4   :  { %v680_v27 = vperm.slane %v654_v25, %v2276_v1 }
 0x2a6   :  { %v681_v31 = vsel %vm490_vm1, %v680_v27, %v679_v3 }
 0x2a7   :  { %v690_v36 = vsel %vm2687_vm7, %v681_v31, %v689_v59 }
 0x2a8   :  { %v691_v29 = vsel %vm2686_vm8, %v684_v35, %v690_v36 }
 0x2a9   :  { %v693_v39 = vsel %vm528_vm9, %v691_v29, 0.0 }
 0x2aa   :  { %694 = vadd.xlane.f32.xlu1 %v693_v39 }
 0x31d   :  { %v2444_v40 = vpop.xlane.xlu1 %694 }
 0x31e   :  { %v699_v41 = vperm.slane %v2444_v40, 2  ;;  %v2448_v42 = vperm.slane %v2444_v40, 0  ;;  %v701_v43 = vperm.slane %v2444_v40, 4  ;;  %v702_v44 = vperm.slane %v2444_v40, 5 }
 0x31f   :  { %v2454_v45 = vperm.slane %v2444_v40, 1  ;;  %v2460_v53 = vperm.slane %v2444_v40, 3  ;;  %v2485_v29 = vperm.slane %v2444_v40, 6 }
 0x320   :  { %1624 = vrcp.f32 %v699_v41  ;;  %v754_v52 = vand.u32 2147483647, %v699_v41  ;;  %v786_v62 = vand.u32 2147483647, %v701_v43  ;;  %v756_v57 = vand.u32 2147483648, %v699_v41 }
 0x321   :  { %1626 = vrcp.f32 %v2448_v42  ;;  %vm782_vm11 = vweird.f32 %v701_v43  ;;  %v788_v7 = vand.u32 2147483648, %v701_v43  ;;  %vm750_vm12 = vweird.f32 %v699_v41 }
 0x322   :  { %1628 = vrcp.f32 %v701_v43  ;;  %vm755_vm14 = vcmp.eq.f32.partialorder %v754_v52, 8.507059e+37  ;;  %vm2464_vm15 = vcmp.eq.f32.partialorder %v786_v62, 8.507059e+37  ;;  %v757_v12 = vor.u32 1.1754944e-38, %v756_v57 }
 0x323   :  { %1630 = vrcp.f32 %v702_v44  ;;  %vm798_vm8 = vweird.f32 %v702_v44  ;;  %v789_v18 = vor.u32 1.1754944e-38, %v788_v7  ;;  %v804_v25 = vand.u32 2147483648, %v702_v44 }
 0x324   :  { %1632 = vrcp.f32 %v2454_v45  ;;  %v802_v30 = vand.u32 2147483647, %v702_v44  ;;  %v772_v10 = vand.u32 2147483648, %v2460_v53 }
 0x325   :  { %1634 = vrcp.f32 %v2460_v53  ;;  %v805_v36 = vor.u32 1.1754944e-38, %v804_v25 }
 0x326   :  { %v1625_v47 = vpop.eup %1624  ;;  %1636 = vrcp.f32 %v2485_v29 }
 0x327   :  { %v2456_v23 = vpop.eup %1626  ;;  %v746_v48 = vmul.f32 %v1625_v47, %v699_v41  ;;  %vm751_vm10 = vweird.f32 %v1625_v47 }
 0x328   :  { %v1629_v49 = vpop.eup %1628  ;;  %v714_v5 = vmul.f32 %v2456_v23, %v2448_v42  ;;  %vm752_vm0 = vmor %vm750_vm12, %vm751_vm10 }
 0x329   :  { %v1631_v50 = vpop.eup %1630  ;;  %v778_v51 = vmul.f32 %v1629_v49, %v701_v43  ;;  %v747_v46 = vsub.f32 1.0, %v746_v48  ;;  %vm783_vm13 = vweird.f32 %v1629_v49 }
 0x32a   :  { %v794_v4 = vmul.f32 %v1631_v50, %v702_v44  ;;  %v2468_v15 = vpop.eup %1632  ;;  %vm799_vm7 = vweird.f32 %v1631_v50  ;;  %v715_v17 = vsub.f32 1.0, %v714_v5  ;;  %vm784_vm6 = vmor %vm782_vm11, %vm783_vm13  ;;  %vm734_vm13 = vweird.f32 %v2454_v45 }
 0x32b   :  { %v779_v56 = vsub.f32 1.0, %v778_v51  ;;  %v748_v54 = vmul.f32 %v1625_v47, %v747_v46  ;;  %v730_v59 = vmul.f32 %v2468_v15, %v2454_v45  ;;  %v1635_v44 = vpop.eup %1634  ;;  %vm735_vm12 = vweird.f32 %v2468_v15 }
 0x32c   :  { %v795_v55 = vsub.f32 1.0, %v794_v4  ;;  %v762_v46 = vmul.f32 %v1635_v44, %v2460_v53  ;;  %v1637_v57 = vpop.eup %1636  ;;  %v740_v4 = vand.u32 2147483648, %v2454_v45 }
 0x32d   :  { %v780_v0 = vmul.f32 %v1629_v49, %v779_v56  ;;  %v749_v9 = vadd.f32 %v1625_v47, %v748_v54  ;;  %v731_v43 = vsub.f32 1.0, %v730_v59  ;;  %v738_v54 = vand.u32 2147483647, %v2454_v45 }
 0x32e   :  { %v796_v13 = vmul.f32 %v1631_v50, %v795_v55  ;;  %v810_v7 = vmul.f32 %v1637_v57, %v2485_v29  ;;  %v741_v55 = vor.u32 1.1754944e-38, %v740_v4  ;;  %v946_v4 = vld [vmem:[#allocation5 + $0x40] sm:$0xff] }
 0x32f   :  { %v781_v58 = vadd.f32 %v1629_v49, %v780_v0  ;;  %v753_v61 = vsel %vm752_vm0, %v1625_v47, %v749_v9  ;;  %vm800_vm0 = vmor %vm798_vm8, %vm799_vm7  ;;  %vm719_vm7 = vweird.f32 %v2456_v23  ;;  %vm718_vm8 = vweird.f32 %v2448_v42 }
 0x330   :  { %v758_v19 = vsel %vm755_vm14, %v757_v12, %v753_v61  ;;  %v797_v21 = vadd.f32 %v1631_v50, %v796_v13  ;;  %vm720_vm10 = vmor %vm718_vm8, %vm719_vm7  ;;  %v732_v51 = vmul.f32 %v2468_v15, %v731_v43  ;;  %v770_v13 = vand.u32 2147483647, %v2460_v53 }
 0x331   :  { %v785_v24 = vsel %vm784_vm6, %v1629_v49, %v781_v58  ;;  %v760_v3 = vmul.f32 %v2365_v14, %v758_v19  ;;  %v759_v27 = vmul.f32 %v2383_v60, %v758_v19  ;;  %v716_v60 = vmul.f32 %v2456_v23, %v715_v17  ;;  %vm736_vm14 = vmor %vm734_vm13, %vm735_vm12 }
 0x332   :  { %v2476_v31 = vsel %vm2464_vm15, %v789_v18, %v785_v24  ;;  %v801_v14 = vsel %vm800_vm0, %v1631_v50, %v797_v21  ;;  %vm803_vm6 = vcmp.eq.f32.partialorder %v802_v30, 8.507059e+37  ;;  %v722_v49 = vand.u32 2147483647, %v2448_v42 }
 0x333   :  { %v791_v35 = vmul.f32 %v2367_v16, %v2476_v31  ;;  %873 = vperm.xlu2 %1552, %v760_v3   ;;  %870 = vperm.xlu0 %1553, %v759_v27   ;;  %v806_v39 = vsel %vm803_vm6, %v805_v36, %v801_v14  ;;  %v717_v41 = vadd.f32 %v2456_v23, %v716_v60  ;;  %v724_v16 = vand.u32 2147483648, %v2448_v42 }
 0x334   :  { %v808_v47 = vmul.f32 %v2380_v26, %v806_v39  ;;  %v807_v48 = vmul.f32 %v2389_v28, %v806_v39  ;;  %vm723_vm11 = vcmp.eq.f32.partialorder %v722_v49, 8.507059e+37  ;;  %v2499_v26 = vperm.slane %v2444_v40, 7  ;;  %v1140_v49 = vld [vmem:[#allocation11 + $0x8] sm:$0xff] }
 0x335   :  { %882 = vperm.xlu1 %1554, %v791_v35   ;;  %v721_v50 = vsel %vm720_vm10, %v2456_v23, %v717_v41  ;;  %v725_v52 = vor.u32 1.1754944e-38, %v724_v16  ;;  %v733_v62 = vadd.f32 %v2468_v15, %v732_v51  ;;  %v763_v42 = vsub.f32 1.0, %v762_v46  ;;  %v940_v16 = vld [vmem:[#allocation5 + $0x10] sm:$0xff]  ;;  %v945_v51 = vld [vmem:[#allocation5 + $0x38] sm:$0xff] }
 0x336   :  { %1638 = vrcp.f32 %v2499_v26  ;;  %vm739_vm15 = vcmp.eq.f32.partialorder %v738_v54, 8.507059e+37  ;;  %vm767_vm0 = vweird.f32 %v1635_v44  ;;  %vm766_vm6 = vweird.f32 %v2460_v53  ;;  %v944_v46 = vld [vmem:[#allocation5 + $0x30] sm:$0xff] }
 0x337   :  { %v726_v28 = vsel %vm723_vm11, %v725_v52, %v721_v50  ;;  %v737_v40 = vsel %vm736_vm14, %v2468_v15, %v733_v62  ;;  %v764_v5 = vmul.f32 %v1635_v44, %v763_v42  ;;  %vm768_vm7 = vmor %vm766_vm6, %vm767_vm0  ;;  %v773_v17 = vor.u32 1.1754944e-38, %v772_v10 }
 0x338   :  { %v728_v23 = vmul.f32 %v2354_v8, %v726_v28  ;;  %v727_v56 = vmul.f32 %v2357_v2, %v726_v28  ;;  %v742_v0 = vsel %vm739_vm15, %v741_v55, %v737_v40  ;;  %v811_v2 = vsub.f32 1.0, %v810_v7  ;;  %v1138_v40 = vld [vmem:[#allocation7] sm:$0xff]  ;;  %v951_v55 = vld [vmem:[#allocation5 + $0x68] sm:$0xff] }
 0x339   :  { %v765_v8 = vadd.f32 %v1635_v44, %v764_v5  ;;  %v744_v45 = vmul.f32 %v2370_v11, %v742_v0  ;;  %v743_v12 = vmul.f32 %v2352_v6, %v742_v0  ;;  %vm771_vm8 = vcmp.eq.f32.partialorder %v770_v13, 8.507059e+37  ;;  %v950_v0 = vld [vmem:[#allocation5 + $0x60] sm:$0xff] }
 0x33a   :  { %v812_v58 = vmul.f32 %v1637_v57, %v811_v2  ;;  %vm815_vm10 = vweird.f32 %v1637_v57  ;;  %v820_v11 = vand.u32 2147483648, %v2485_v29  ;;  %vm814_vm11 = vweird.f32 %v2485_v29 }
 0x33b   :  { %891 = vperm.xlu2 %1552, %v808_v47   ;;  %888 = vperm.xlu0 %1553, %v807_v48   ;;  %v769_v15 = vsel %vm768_vm7, %v1635_v44, %v765_v8  ;;  %v818_v53 = vand.u32 2147483647, %v2485_v29  ;;  %vm816_vm12 = vmor %vm814_vm11, %vm815_vm10  ;;  %v836_v35 = vand.u32 2147483648, %v2499_v26  ;;  %vm830_vm15 = vweird.f32 %v2499_v26  ;;  %v941_v44 = vld [vmem:[#allocation5 + $0x18] sm:$0xff] }
 0x33c   :  { %v1639_v9 = vpop.eup %1638  ;;  %v774_v18 = vsel %vm771_vm8, %v773_v17, %v769_v15  ;;  %v813_v19 = vadd.f32 %v1637_v57, %v812_v58  ;;  %v821_v27 = vor.u32 1.1754944e-38, %v820_v11  ;;  %v834_v14 = vand.u32 2147483647, %v2499_v26  ;;  %992 = vmatpush.msrb.mxu2 %v941_v44 }
 0x33d   :  { %v826_v61 = vmul.f32 %v1639_v9, %v2499_v26  ;;  %v776_v6 = vmul.f32 %v2378_v22, %v774_v18  ;;  %v775_v25 = vmul.f32 %v2394_v33, %v774_v18  ;;  %vm819_vm13 = vcmp.eq.f32.partialorder %v818_v53, 8.507059e+37 }
 0x33e   :  { %v817_v24 = vsel %vm816_vm12, %v1637_v57, %v813_v19  ;;  %vm831_vm14 = vweird.f32 %v1639_v9  ;;  %v792_v33 = vmul.f32 %v2402_v20, %v2476_v31  ;;  %v837_v36 = vor.u32 1.1754944e-38, %v836_v35  ;;  %v939_v20 = vld [vmem:[#allocation5 + $0x8] sm:$0xff]  ;;  %v938_v31 = vld [vmem:[#allocation5] sm:$0xff]  ;;  %993 = vmatpush.msrb.mxu2 %v940_v16 }
 0x33f   :  { %v827_v21 = vsub.f32 1.0, %v826_v61  ;;  %v822_v30 = vsel %vm819_vm13, %v821_v27, %v817_v24  ;;  %vm832_vm0 = vmor %vm830_vm15, %vm831_vm14  ;;  %vm835_vm6 = vcmp.eq.f32.partialorder %v834_v14, 8.507059e+37  ;;  %970 = vmatpush.msrb.mxu1 %v939_v20  ;;  %v947_v57 = vld [vmem:[#allocation5 + $0x48] sm:$0xff]  ;;  %vm2706_vm7 = vcmask 1045509   ;;  %v1172_v20 = vld [vmem:[%s2667_s9 + $0x18] sm:$0xff] }
 0x340   :  { %v823_v22 = vmul.f32 %v2406_v37, %v822_v30  ;;  %v824_v41 = vmul.f32 %v2399_v34, %v822_v30  ;;  %1058 = vmatpush.msra.mxu2 %v947_v57  ;;  %vm2707_vm8 = vcmask 1046534   ;;  %vm2708_vm10 = vcmask 1047559   ;;  %v1556_v16 = vld [vmem:[#allocation13] ss:$0 sm:$0xff] }
 0x341   :  { %v828_v3 = vmul.f32 %v1639_v9, %v827_v21  ;;  %971 = vmatpush.msrb.mxu1 %v938_v31  ;;  %v1169_v31 = vld [vmem:[%s2667_s9] sm:$0xff]  ;;  %vm2711_vm11 = vmmov %vm2707_vm8 }
 0x342   :  { %1059 = vmatpush.msra.mxu2 %v946_v4 }
 0x343   :  { %861 = vperm.xlu2 %1552, %v728_v23   ;;  %858 = vperm.xlu0 %1553, %v727_v56   ;;  %v829_v59 = vadd.f32 %v1639_v9, %v828_v3 }
 0x344   :  { %1036 = vmatpush.msra.mxu1 %v945_v51  ;;  %v1359_v51 = vld [vmem:[%s2674_s16 + $0x18] sm:$0xff] }
 0x345   :  { %v833_v60 = vsel %vm832_vm0, %v1639_v9, %v829_v59 }
 0x346   :  { %v838_v29 = vsel %vm835_vm6, %v837_v36, %v833_v60  ;;  %1037 = vmatpush.msra.mxu1 %v944_v46  ;;  %v1358_v46 = vld [vmem:[%s2674_s16 + $0x10] sm:$0xff] }
 0x347   :  { %v839_v39 = vmul.f32 %v2391_v32, %v838_v29  ;;  %v840_v37 = vmul.f32 %v2409_v38, %v838_v29  ;;  %v1139_v38 = vld [vmem:[#allocation11] sm:$0xff] }
 0x34b   :  { %867 = vperm.xlu2 %1552, %v744_v45   ;;  %864 = vperm.xlu0 %1553, %v743_v12   ;;  %v953_v45 = vld [vmem:[#allocation5 + $0x78] sm:$0xff]  ;;  %v952_v12 = vld [vmem:[#allocation5 + $0x70] sm:$0xff] }
 0x353   :  { %879 = vperm.xlu2 %1552, %v776_v6   ;;  %876 = vperm.xlu0 %1553, %v775_v25  }
 0x35b   :  { %894 = vperm.xlu2 %1552, %v823_v22   ;;  %885 = vperm.xlu0 %1553, %v792_v33  }
 0x363   :  { %900 = vperm.xlu2 %1552, %v839_v39   ;;  %897 = vperm.xlu0 %1553, %v824_v41  }
 0x36b   :  { %903 = vperm.xlu0 %1553, %v840_v37  }
 0x38d   :  { %v874_v43 = vpop.permute.xlu2 %873 }
 0x38e   :  { %v912_v32 = vperm.slane %v874_v43, %v2276_v1 }
 0x395   :  { %v892_v47 = vpop.permute.xlu2 %891 }
 0x396   :  { %v921_v26 = vperm.slane %v892_v47, %v2276_v1  ;;  %v1210_v47 = vld [vmem:[#allocation16 + $0x18] sm:$0xff] }
 0x39d   :  { %v862_v62 = vpop.permute.xlu2 %861 }
 0x39e   :  { %v906_v56 = vperm.slane %v862_v62, %v2276_v1  ;;  %v1206_v62 = vld [vmem:[%s2669_s11 + $0x18] sm:$0xff] }
 0x3a5   :  { %v871_v48 = vpop.permute.xlu0 %870  ;;  %v868_v7 = vpop.permute.xlu2 %867 }
 0x3a6   :  { %v911_v34 = vperm.slane %v871_v48, %v2271_v63  ;;  %v909_v2 = vperm.slane %v868_v7, %v2276_v1  ;;  %v1209_v48 = vld [vmem:[#allocation16 + $0x10] sm:$0xff] }
 0x3a7   :  { %v883_v18 = vpop.permute.xlu1 %882 }
 0x3a8   :  { %v913_v50 = vsel %vm490_vm1, %v912_v32, %v911_v34  ;;  %v917_v21 = vperm.slane %v883_v18, %v2271_v63  ;;  %v1281_v18 = vld [vmem:[#allocation17 + $0x18] sm:$0xff] }
 0x3a9   :  { %1506 = vmatmul.msk.f32.vlgmr.msrb.gmra.mxu3 %vm528_vm9, %v913_v50 }
 0x3aa   :  { %1162 = vmatpush.msrb.mxu3 %v1140_v49 }
 0x3ac   :  { %1163 = vmatpush.msrb.mxu3 %v1139_v38  ;;  %v1207_v38 = vld [vmem:[#allocation16] sm:$0xff] }
 0x3ad   :  { %v889_v52 = vpop.permute.xlu0 %888  ;;  %v880_v13 = vpop.permute.xlu2 %879 }
 0x3ae   :  { %v920_v28 = vperm.slane %v889_v52, %v2271_v63  ;;  %v915_v58 = vperm.slane %v880_v13, %v2276_v1  ;;  %v1357_v52 = vld [vmem:[%s2674_s16 + $0x8] sm:$0xff] }
 0x3b0   :  { %v922_v42 = vsel %vm490_vm1, %v921_v26, %v920_v28  ;;  %v1356_v26 = vld [vmem:[%s2674_s16] sm:$0xff]  ;;  %s2020_s16 = smov [#allocation23]  }
 0x3b1   :  { %1509 = vmatmul.msk.f32.vlgmr.msra.gmra.mxu3 %vm528_vm9, %v922_v42  ;;  %s1457_s2 = sshll.u32 %s2020_s16, 4  ;;  %s1458_s2 = int_to_ptr.vmem [resolvable:$true] %s1457_s2 }
 0x3b2   :  { %1270 = vmatpush.msra.mxu3 %v1206_v62  ;;  %v1352_v62 = vld [vmem:[%s2673_s15] sm:$0xff] }
 0x3b5   :  { %v859_v23 = vpop.permute.xlu0 %858  ;;  %v895_v25 = vpop.permute.xlu2 %894 }
 0x3b6   :  { %v905_v54 = vperm.slane %v859_v23, %v2271_v63  ;;  %v923_v24 = vperm.slane %v895_v25, %v2271_v63  ;;  %v1557_v25 = vld [vmem:[#allocation14] ss:$0 sm:$0xff] }
 0x3b8   :  { %v907_v5 = vsel %vm490_vm1, %v906_v56, %v905_v54 }
 0x3b9   :  { %1504 = vmatmul.msk.f32.vlgmr.msrb.gmra.mxu1 %vm528_vm9, %v907_v5  ;;  %1512 = vmatmul.msk.f32.vlgmr.msrb.gmra.mxu3 %vm528_vm9, %v1138_v40 }
 0x3ba   :  { %1102 = vmatpush.msrb.mxu1 %v951_v55 }
 0x3bc   :  { %1103 = vmatpush.msrb.mxu1 %v950_v0 }
 0x3bd   :  { %v865_v8 = vpop.permute.xlu0 %864  ;;  %v901_v35 = vpop.permute.xlu2 %900 }
 0x3be   :  { %v908_v9 = vperm.slane %v865_v8, %v2271_v63  ;;  %v926_v60 = vperm.slane %v901_v35, %v2271_v63 }
 0x3c0   :  { %v910_v10 = vsel %vm490_vm1, %v909_v2, %v908_v9 }
 0x3c1   :  { %1505 = vmatmul.msk.f32.vlgmr.msrb.gmra.mxu2 %vm528_vm9, %v910_v10  ;;  %v929_v27 = vsel %vm513_vm2, %v910_v10, %v907_v5 }
 0x3c2   :  { %1124 = vmatpush.msrb.mxu2 %v953_v45  ;;  %v930_v59 = vsel %vm515_vm3, %v913_v50, %v929_v27  ;;  %v1208_v50 = vld [vmem:[#allocation16 + $0x8] sm:$0xff] }
 0x3c3   :  { %v1202_v27 = vld [vmem:[#allocation10] sm:$0xff] }
 0x3c4   :  { %1125 = vmatpush.msrb.mxu2 %v952_v12 }
 0x3c5   :  { %v877_v15 = vpop.permute.xlu0 %876 }
 0x3c6   :  { %v914_v61 = vperm.slane %v877_v15, %v2271_v63  ;;  %v1171_v63 = vld [vmem:[%s2667_s9 + $0x10] sm:$0xff] }
 0x3c8   :  { %v916_v17 = vsel %vm490_vm1, %v915_v58, %v914_v61  ;;  %v1204_v61 = vld [vmem:[%s2669_s11 + $0x8] sm:$0xff] }
 0x3c9   :  { %1507 = vmatmul.msk.f32.vlgmr.msra.gmra.mxu1 %vm528_vm9, %v916_v17  ;;  %v931_v22 = vsel %vm517_vm4, %v916_v17, %v930_v59  ;;  %v1203_v17 = vld [vmem:[%s2669_s11] sm:$0xff] }
 0x3ca   :  { %1192 = vmatpush.msra.mxu1 %v1172_v20 }
 0x3cc   :  { %1193 = vmatpush.msra.mxu1 %v1171_v63 }
 0x3cd   :  { %v886_v19 = vpop.permute.xlu0 %885 }
 0x3ce   :  { %v918_v11 = vperm.slane %v886_v19, %v2276_v1  ;;  %v1280_v19 = vld [vmem:[#allocation17 + $0x10] sm:$0xff] }
 0x3d0   :  { %v919_v6 = vsel %vm490_vm1, %v918_v11, %v917_v21  ;;  %v1279_v21 = vld [vmem:[#allocation17 + $0x8] sm:$0xff]  ;;  %v1278_v11 = vld [vmem:[#allocation17] sm:$0xff] }
 0x3d1   :  { %1508 = vmatmul.msk.f32.vlgmr.msra.gmra.mxu2 %vm528_vm9, %v919_v6  ;;  %v932_v33 = vsel %vm519_vm5, %v919_v6, %v931_v22  ;;  %v1201_v6 = vld [vmem:[#allocation8] sm:$0xff] }
 0x3d2   :  { %v933_v29 = vsel %vm2706_vm7, %v922_v42, %v932_v33  ;;  %1247 = vmatpush.msra.mxu2 %v1210_v47  ;;  %v1205_v42 = vld [vmem:[%s2669_s11 + $0x10] sm:$0xff]  ;;  %s2015_s11 = smov 32   ;;  %v1558_v33 = vld [vmem:[%s2672_s14] ss:$0 sm:$0xff]  ;;  %s2017_s14 = smov 96  }
 0x3d3   :  { %1271 = vmatpush.msra.mxu3 %v1205_v42  ;;  %1332 = vrot.lane.b32.xlu1 %v1202_v27, %s2015_s11 }
 0x3d4   :  { %1248 = vmatpush.msra.mxu2 %v1209_v48 }
 0x3d5   :  { %v898_v53 = vpop.permute.xlu0 %897  ;;  %1272 = vmatpush.msra.mxu3 %v1204_v61 }
 0x3d6   :  { %v924_v3 = vperm.slane %v898_v53, %v2276_v1  ;;  %1249 = vmatpush.msra.mxu2 %v1208_v50 }
 0x3d7   :  { %1273 = vmatpush.msra.mxu3 %v1203_v17 }
 0x3d8   :  { %v925_v30 = vsel %vm490_vm1, %v924_v3, %v923_v24  ;;  %1250 = vmatpush.msra.mxu2 %v1207_v38 }
 0x3d9   :  { %1510 = vmatmul.msk.f32.vlgmr.msrb.gmra.mxu1 %vm528_vm9, %v925_v30  ;;  %v934_v39 = vsel %vm2707_vm8, %v925_v30, %v933_v29 }
 0x3dd   :  { %v904_v14 = vpop.permute.xlu0 %903 }
 0x3de   :  { %v927_v36 = vperm.slane %v904_v14, %v2276_v1  ;;  %v1170_v1 = vld [vmem:[%s2667_s9 + $0x8] sm:$0xff] }
 0x3df   :  { %1194 = vmatpush.msra.mxu1 %v1170_v1 }
 0x3e0   :  { %v928_v41 = vsel %vm490_vm1, %v927_v36, %v926_v60  ;;  %vm2709_vm1 = vcmask 261120  }
 0x3e1   :  { %1511 = vmatmul.msk.f32.vlgmr.msrb.gmra.mxu2 %vm528_vm9, %v928_v41  ;;  %v935_v37 = vsel %vm2708_vm10, %v928_v41, %v934_v39  ;;  %1195 = vmatpush.msra.mxu1 %v1169_v31  ;;  %vm2713_vm12 = vmmov %vm2709_vm1 }
 0x3e2   :  { %937 = vst.msk [vmem:[#allocation23] sm:$0xff] %vm528_vm9, %v935_v37  ;;  %1372 = vmatpush.msrb.mxu2 %v1359_v51  ;;  %vm2710_vm9 = vmmov %vm2706_vm7 }
 0x3e3   :  { %vm2714_vm13 = vmmov %vm2709_vm1  ;;  %1297 = vmatpush.msrb.mxu1 %v1281_v18  ;;  %1462 = dma.vmem_to_hbm [thread:$0]  %s1458_s2, 128, %s1460_s19, [#allocation24]  }
 0x3e4   :  { %1373 = vmatpush.msrb.mxu2 %v1358_v46  ;;  %vm2717_vm6 = vmmov %vm2709_vm1 }
 0x3e5   :  { %1298 = vmatpush.msrb.mxu1 %v1280_v19  ;;  %vm2718_vm7 = vmmov %vm2709_vm1 }
 0x3e6   :  { %1374 = vmatpush.msrb.mxu2 %v1357_v52  ;;  %v1355_v52 = vld [vmem:[%s2673_s15 + $0x18] sm:$0xff]  ;;  %vm2719_vm8 = vmmov %vm2709_vm1 }
 0x3e7   :  { %1299 = vmatpush.msrb.mxu1 %v1279_v21  ;;  %1397 = vmatpush.msrb.mxu3 %v1355_v52 }
 0x3e8   :  { %1375 = vmatpush.msrb.mxu2 %v1356_v26  ;;  %v1354_v26 = vld [vmem:[%s2673_s15 + $0x10] sm:$0xff] }
 0x3e9   :  { %1300 = vmatpush.msrb.mxu1 %v1278_v11  ;;  %1398 = vmatpush.msrb.mxu3 %v1354_v26 }
 0x42c   :  { %v1017_v43 = vpop.f32.mrf.mxu3 }
 0x42d   :  { %v1221_v40 = vrot.slane %v1017_v43, 6 }
 0x434   :  { %v1083_v44 = vpop.f32.mrf.mxu3 }
 0x435   :  { %v1227_v9 = vrot.slane %v1083_v44, 3 }
 0x436   :  { %v973_v28 = vpop.f32.mrf.mxu1 }
 0x43c   :  { %v1165_v32 = vpop.f32.mrf.mxu3 }
 0x43d   :  { %v1166_v34 = vadd.f32 %v1556_v16, %v1165_v32 }
 0x43f   :  { %v1168_v49 = vmax.f32 %v1166_v34, 0.0 }
 0x441   :  { %1513 = vmatmul.msk.f32.vlgmr.msra.gmra.mxu1 %vm2709_vm1, %v1168_v49 }
 0x444   :  { %v995_v57 = vpop.f32.mrf.mxu2 }
 0x445   :  { %v1219_v4 = vrot.slane %v995_v57, 7  ;;  %v1333_v49 = vpop.permute.xlu1 %1332 }
 0x446   :  { %v1039_v23 = vpop.f32.mrf.mxu1 }
 0x447   :  { %v1220_v56 = vsel %vm513_vm2, %v1219_v4, %v973_v28  ;;  %v1223_v5 = vrot.slane %v1039_v23, 5  ;;  %vm2712_vm2 = vmmov %vm2708_vm10  ;;  %v1353_v28 = vld [vmem:[%s2673_s15 + $0x8] sm:$0xff]  ;;  %s1435_s15 = sshll.u32 %s2018_s23, 4  ;;  %vm1410_vm10 = vcmask 138240   ;;  %s1436_s15 = int_to_ptr.vmem [resolvable:$true] %s1435_s15 }
 0x448   :  { %v1222_v7 = vsel %vm515_vm3, %v1221_v40, %v1220_v56  ;;  %vm2715_vm3 = vmmov %vm2709_vm1  ;;  %1399 = vmatpush.msrb.mxu3 %v1353_v28  ;;  %v1559_v56 = vld [vmem:[%s2675_s17] ss:$0 sm:$0xff] }
 0x449   :  { %v1224_v0 = vsel %vm517_vm4, %v1223_v5, %v1222_v7  ;;  %1516 = vmatmul.msk.f32.vlgmr.msrb.gmra.mxu1 %vm2715_vm3, %v1201_v6  ;;  %vm2716_vm4 = vmmov %vm2709_vm1 }
 0x44a   :  { %1400 = vmatpush.msrb.mxu3 %v1352_v62 }
 0x454   :  { %v1061_v54 = vpop.f32.mrf.mxu2 }
 0x455   :  { %v1225_v55 = vrot.slane %v1061_v54, 4 }
 0x456   :  { %v1105_v8 = vpop.f32.mrf.mxu1 }
 0x457   :  { %v1226_v2 = vsel %vm519_vm5, %v1225_v55, %v1224_v0  ;;  %v1229_v10 = vrot.slane %v1105_v8, 2 }
 0x458   :  { %v1228_v45 = vsel %vm2710_vm9, %v1227_v9, %v1226_v2 }
 0x459   :  { %v1230_v15 = vsel %vm2711_vm11, %v1229_v10, %v1228_v45 }
 0x464   :  { %v1127_v12 = vpop.f32.mrf.mxu2 }
 0x465   :  { %v1231_v13 = vrot.slane %v1127_v12, 1 }
 0x467   :  { %v1232_v58 = vsel %vm2712_vm2, %v1231_v13, %v1230_v15 }
 0x468   :  { %1514 = vmatmul.msk.f32.vlgmr.msra.gmra.mxu2 %vm2713_vm12, %v1232_v58 }
 0x470   :  { %1518 = vmatmul.msk.f32.vlgmr.msrb.gmra.mxu2 %vm2714_vm13, %v1232_v58 }
 0x4be   :  { %v1197_v53 = vpop.f32.mrf.mxu1 }
 0x4bf   :  { %v1198_v24 = vadd.f32 %v1557_v25, %v1197_v53 }
 0x4c1   :  { %v1200_v3 = vmax.f32 %v1198_v24, 0.0 }
 0x4c3   :  { %1515 = vmatmul.msk.f32.vlgmr.msra.gmra.mxu3 %vm2716_vm4, %v1200_v3 }
 0x4c6   :  { %v1302_v35 = vpop.f32.mrf.mxu1 }
 0x4eb   :  { %v1252_v30 = vpop.f32.mrf.mxu2 }
 0x4f3   :  { %v1377_v54 = vpop.f32.mrf.mxu2 }
 0x546   :  { %v1275_v59 = vpop.f32.mrf.mxu3 }
 0x547   :  { %v1276_v22 = vadd.f32 %v1275_v59, %v1252_v30 }
 0x549   :  { %v1305_v14 = vadd.f32 %v1302_v35, %v1276_v22 }
 0x54b   :  { %v1310_v60 = vadd.f32 %v1558_v33, %v1305_v14 }
 0x54d   :  { %1640 = vtanh.f32 %v1310_v60  ;;  %v1517_v29 = vmul.f32 -1.442695, %v1310_v60 }
 0x54f   :  { %1642 = vpow2.f32 %v1517_v29 }
 0x553   :  { %v1641_v36 = vpop.eup %1640 }
 0x554   :  { %1337 = vrot.lane.b32.xlu2 %v1641_v36, %s2016_s5 }
 0x555   :  { %v1643_v39 = vpop.eup %1642 }
 0x556   :  { %v1314_v41 = vadd.f32 1.0, %v1643_v39 }
 0x558   :  { %1644 = vrcp.f32 %v1314_v41  ;;  %v1326_v43 = vand.u32 2147483648, %v1314_v41  ;;  %vm1320_vm14 = vweird.f32 %v1314_v41  ;;  %v1324_v44 = vand.u32 2147483647, %v1314_v41 }
 0x55a   :  { %v1327_v47 = vor.u32 1.1754944e-38, %v1326_v43  ;;  %vm1325_vm0 = vcmp.eq.f32.partialorder %v1324_v44, 8.507059e+37 }
 0x55e   :  { %v1645_v37 = vpop.eup %1644 }
 0x55f   :  { %v1316_v20 = vmul.f32 %v1645_v37, %v1314_v41  ;;  %vm1321_vm5 = vweird.f32 %v1645_v37 }
 0x560   :  { %vm1322_vm15 = vmor %vm1320_vm14, %vm1321_vm5 }
 0x561   :  { %v1317_v63 = vsub.f32 1.0, %v1316_v20 }
 0x563   :  { %v1318_v1 = vmul.f32 %v1645_v37, %v1317_v63 }
 0x565   :  { %v1319_v31 = vadd.f32 %v1645_v37, %v1318_v1 }
 0x567   :  { %v1323_v16 = vsel %vm1322_vm15, %v1645_v37, %v1319_v31 }
 0x568   :  { %v1328_v48 = vsel %vm1325_vm0, %v1327_v47, %v1323_v16 }
 0x569   :  { %v1335_v50 = vmul.f32 %v1333_v49, %v1328_v48 }
 0x5ae   :  { %v1338_v32 = vpop.permute.xlu2 %1337 }
 0x5af   :  { %v1340_v34 = vmul.f32 %v1338_v32, %v1328_v48 }
 0x5b1   :  { %1342 = vrot.lane.b32.xlu0 %v1340_v34, %s2015_s11 }
 0x623   :  { %v1343_v38 = vpop.permute.xlu0 %1342 }
 0x624   :  { %v1345_v51 = vadd.f32 %v1343_v38, %v1335_v50 }
 0x626   :  { %1646 = vtanh.f32 %v1345_v51  ;;  %1415 = vrot.lane.b32.xlu0 %v1345_v51, %s2017_s14 }
 0x62c   :  { %v1647_v46 = vpop.eup %1646 }
 0x62d   :  { %1348 = vrot.lane.b32.xlu2 %v1647_v46, %s2016_s5 }
 0x687   :  { %v1349_v42 = vpop.permute.xlu2 %1348 }
 0x688   :  { %v1351_v57 = vmul.f32 %v1349_v42, %v1328_v48 }
 0x68a   :  { %1381 = vrot.lane.b32.xlu1 %v1351_v57, %s2015_s11 }
 0x698   :  { %v1416_v4 = vpop.permute.xlu0 %1415 }
 0x699   :  { %1418 = vst.msk [vmem:[#allocation22] sm:$0xff] %vm2717_vm6, %v1416_v4 }
 0x6fc   :  { %v1382_v23 = vpop.permute.xlu1 %1381 }
 0x6fd   :  { %1413 = vst.msk [vmem:[#allocation20] sm:$0xff] %vm2718_vm7, %v1382_v23  ;;  %1519 = vmatmul.msk.f32.vlgmr.msrb.gmra.mxu3 %vm2719_vm8, %v1382_v23 }
 0x6fe   :  { %1440 = dma.vmem_to_hbm [thread:$0]  %s1436_s15, 128, %s1438_s13, [#allocation21]  }
 0x6ff   :  { %1451 = dma.vmem_to_hbm [thread:$0]  %s1447_s30, 128, %s1449_s24, [#allocation21]  }
 0x780   :  { %v1402_v40 = vpop.f32.mrf.mxu3 }
 0x781   :  { %v1403_v5 = vadd.f32 %v1402_v40, %v1377_v54 }
 0x783   :  { %v1409_v7 = vadd.f32 %v1559_v56, %v1403_v5 }
 0x785   :  { %1411 = vst.msk [vmem:[#allocation19] sm:$0xff] %vm1410_vm10, %v1409_v7 }
 0x786   :  { %1429 = dma.vmem_to_hbm [thread:$0]  %s1425_s10, 128, %s1427_s3, [#allocation4]  }
 0x787   :  { %1996 = dma.done.wait [#allocation4], 128  }
 0x788   :  { %1997 = vsyncadd [#allocation4], 4294967168 }
 0x789   :  { %1998 = dma.done.wait [#allocation21], 256  }
 0x78a   :  { %1999 = vsyncadd [#allocation21], 4294967040 }
 0x78b   :  { %2000 = dma.done.wait [#allocation24], 128  }
 0x78c   :  { %2001 = vsyncadd [#allocation24], 4294967168 }
 0x78d   :  { %1479 = vsyncpa [#allocation3], 1 }
 0x78e   :  { %1480 = vsyncpa [#allocation6], 1 }
 0x78f   :  { %1481 = vsyncpa [#allocation9], 1 }
 0x790   :  { %1482 = vsyncpa [#allocation12], 1 }
 0x791   :  { %1483 = vsyncpa [#allocation15], 1 }
 0x792   :  { %1484 = vsyncpa [#allocation18], 1 }
 0x793   :  { %1485 = vsyncpa [#allocation4], 1 }
 0x794   :  { %1486 = vsyncpa [#allocation21], 1 }
 0x795   :  { %1487 = vsyncpa [#allocation24], 1 }

</bundles_post_ra>
